<compile_context>
chip_gen: v7x
topology: tpu7x:2x2x1
jax: 0.10.0
libtpu: 0.0.40
codegen_flags: <defaults>
</compile_context>

<pallas_src>
import functools

import jax
import jax.numpy as jnp
from jax.experimental import pallas as pl
from jax.experimental.pallas import tpu as pltpu


def _char_rnn_gru_chunk_kernel(onehot_ref,                  # (T, B, V) f32 one-hot tokens
                               h0_ref,                      # (B, H)    initial hidden
                               wx_ref, wh_ref, bg_ref,      # fused gate weights/bias
                               wdec_ref, bdec_ref,          # decoder (padded, /temp)
                               logits_ref, hout_ref,        # outputs
                               *, hidden_size, seq_len):
    """Whole chunk (T GRU timesteps + decoder) in one kernel invocation."""
    H = hidden_size

    # Weights are tiny -> hoist loads out of the unrolled time loop.
    wx = wx_ref[...]       # (V, 4H)   per-token gate table (embedding ∘ W_ih folded)
    wh = wh_ref[...]       # (H, 4H)   hidden-to-gate block
    bg = bg_ref[...]       # (1, 4H)   fused gate bias
    wd = wdec_ref[...]     # (H, O_pad) decoder weight, pre-scaled by 1/temperature
    bd = bdec_ref[...]     # (1, O_pad) decoder bias,   pre-scaled by 1/temperature

    h = h0_ref[...]        # (B, H)

    # Statically unrolled recurrence: straight-line code, static ref indices.
    # (chunk_len is small for char RNNs; for very long chunks switch to
    #  lax.fori_loop with dynamic leading-axis indexing.)
    for t in range(seq_len):
        oh = onehot_ref[t]                                      # (B, V)
        # Fused gates: (B,V)@(V,4H) + (B,H)@(H,4H) + bias  -> (B, 4H), f32 acc.
        g = (jnp.dot(oh, wx, preferred_element_type=jnp.float32)
             + jnp.dot(h, wh, preferred_element_type=jnp.float32)
             + bg)
        # PyTorch GRU gate order (r, z, n).
        rz = jax.nn.sigmoid(g[:, 0:2 * H])
        r = rz[:, 0:H]
        z = rz[:, H:2 * H]
        n = jnp.tanh(g[:, 2 * H:3 * H] + r * g[:, 3 * H:4 * H])
        h = (1.0 - z) * n + z * h
        # Decoder: lane-dense (B, O_pad) store; temperature already folded in.
        logits_ref[t] = (jnp.dot(h, wd, preferred_element_type=jnp.float32) + bd)

    hout_ref[...] = h


def prepare_params(params, *, temperature=1.0):
    """One-time parameter prep: embedding∘W_ih fusion, block weights, padding."""
    emb = params["embedding"].astype(jnp.float32)    # (V, E)
    w_ih = params["w_ih"].astype(jnp.float32)        # (3H, E)  PyTorch layout
    w_hh = params["w_hh"].astype(jnp.float32)        # (3H, H)
    b_ih = params["b_ih"].astype(jnp.float32)        # (3H,)
    b_hh = params["b_hh"].astype(jnp.float32)        # (3H,)
    w_dec = params["w_dec"].astype(jnp.float32)      # (O, H)
    b_dec = params["b_dec"].astype(jnp.float32)      # (O,)

    V, _E = emb.shape
    H = w_hh.shape[1]
    O = w_dec.shape[0]
    O_pad = ((O + 127) // 128) * 128

    # Fold Embedding followed by the input projection into one per-token table:
    # gi_table[v] = emb[v] @ W_ih^T  (V, 3H), columns ordered [r | z | n].
    gi_tab = emb @ w_ih.T                            # (V, 3H)
    w_hh_t = w_hh.T                                  # (H, 3H)

    zero_vh = jnp.zeros((V, H), jnp.float32)
    zero_hh = jnp.zeros((H, H), jnp.float32)

    # Gate blocks (columns): [0:2H] = r,z (input + hidden), [2H:3H] = gi_n,
    # [3H:4H] = gh_n.
    wx = jnp.concatenate(
        [gi_tab[:, 0:2 * H], gi_tab[:, 2 * H:3 * H], zero_vh], axis=1)   # (V, 4H)
    wh = jnp.concatenate(
        [w_hh_t[:, 0:2 * H], zero_hh, w_hh_t[:, 2 * H:3 * H]], axis=1)   # (H, 4H)
    bg = jnp.concatenate(
        [b_ih[0:2 * H] + b_hh[0:2 * H], b_ih[2 * H:3 * H], b_hh[2 * H:3 * H]]
    ).reshape(1, 4 * H)

    # Lane-dense decoder, pre-scaled by 1/temperature (one-time weight fold).
    inv_t = jnp.float32(1.0 / temperature)
    w_dec_pad = jnp.zeros((H, O_pad), jnp.float32).at[:, :O].set(w_dec.T * inv_t)
    b_dec_pad = jnp.zeros((1, O_pad), jnp.float32).at[0, :O].set(b_dec * inv_t)

    return {
        "wx": wx, "wh": wh, "bg": bg,
        "w_dec_pad": w_dec_pad, "b_dec_pad": b_dec_pad,
        "V": V, "H": H, "O": O, "O_pad": O_pad,
    }


def char_rnn_forward_seq(token_ids, hidden, prepped):
    """Run T fused GRU+decoder timesteps in a single pallas_call.

    token_ids: (T, B) int32 — tokens fed at each step (as in CharRNN.train()).
    hidden:    (1, B, H) float32 initial hidden state (init_hidden()).
    Returns (logits (T, B, O), final hidden (1, B, H)).
    """
    token_ids = token_ids.astype(jnp.int32)
    T, B = token_ids.shape
    V, H, O, O_pad = prepped["V"], prepped["H"], prepped["O"], prepped["O_pad"]
    h0 = hidden[0]                                           # (B, H)

    # Input encoding only (no model compute): one tiny op per chunk.
    onehot = jax.nn.one_hot(token_ids, V, dtype=jnp.float32)  # (T, B, V)

    kernel = functools.partial(_char_rnn_gru_chunk_kernel,
                               hidden_size=H, seq_len=T)

    def full(shape):
        nd = len(shape)
        return pl.BlockSpec(shape, lambda i, _n=nd: (0,) * _n)

    cost = pl.CostEstimate(
        flops=T * (2 * B * V * 4 * H + 2 * B * H * 4 * H + 2 * B * H * O_pad),
        transcendentals=T * B * 3 * H,
        bytes_accessed=4 * (T * B * V + B * H + V * 4 * H + H * 4 * H + 4 * H
                            + H * O_pad + O_pad + T * B * O_pad + B * H),
    )

    logits_pad, h_final = pl.pallas_call(
        kernel,
        grid=(1,),
        in_specs=[
            full((T, B, V)),          # one-hot tokens (resident)
            full((B, H)),             # h0
            full((V, 4 * H)),         # fused per-token gate table
            full((H, 4 * H)),         # hidden-to-gate block
            full((1, 4 * H)),         # fused gate bias
            full((H, O_pad)),         # decoder weight (padded, /temperature)
            full((1, O_pad)),         # decoder bias   (padded, /temperature)
        ],
        out_specs=(
            full((T, B, O_pad)),      # per-step logits (lane-dense)
            full((B, H)),             # final hidden
        ),
        out_shape=(
            jax.ShapeDtypeStruct((T, B, O_pad), jnp.float32),
            jax.ShapeDtypeStruct((B, H), jnp.float32),
        ),
        compiler_params=pltpu.CompilerParams(
            dimension_semantics=("arbitrary",)),
        cost_estimate=cost,
    )(onehot, h0, prepped["wx"], prepped["wh"], prepped["bg"],
      prepped["w_dec_pad"], prepped["b_dec_pad"])

    logits = logits_pad[:, :, :O]                            # strip lane pad
    return logits, h_final[None, :, :]


def char_rnn_forward(token_ids, hidden, prepped):
    """Single-timestep forward matching CharRNN.forward (gru path): T == 1."""
    logits, h_new = char_rnn_forward_seq(token_ids[None, :], hidden, prepped)
    return logits[0], h_new


def _reference_forward_seq(token_ids, hidden, params, *, temperature=1.0):
    """Pure-JAX reference (scan of the PyTorch per-step math)."""
    H = params["w_hh"].shape[1]

    def step(h, ids_t):
        x = params["embedding"][ids_t]
        gi = x @ params["w_ih"].T + params["b_ih"]
        gh = h @ params["w_hh"].T + params["b_hh"]
        r = jax.nn.sigmoid(gi[:, :H] + gh[:, :H])
        z = jax.nn.sigmoid(gi[:, H:2 * H] + gh[:, H:2 * H])
        n = jnp.tanh(gi[:, 2 * H:] + r * gh[:, 2 * H:])
        h_new = (1.0 - z) * n + z * h
        logits = (h_new @ params["w_dec"].T + params["b_dec"]) / temperature
        return h_new, logits

    h_final, logits = jax.lax.scan(step, hidden[0], token_ids)
    return logits, h_final[None, :, :]


def _init_params(key, vocab, embed, hidden, out):
    """Deterministic synthetic parameters (PyTorch-like uniform init)."""
    ks = jax.random.split(key, 7)
    s = 1.0 / jnp.sqrt(hidden)
    u = lambda k, shape, scale: jax.random.uniform(
        k, shape, jnp.float32, -scale, scale)
    return {
        "embedding": jax.random.normal(ks[0], (vocab, embed), jnp.float32),
        "w_ih": u(ks[1], (3 * hidden, embed), s),
        "w_hh": u(ks[2], (3 * hidden, hidden), s),
        "b_ih": u(ks[3], (3 * hidden,), s),
        "b_hh": u(ks[4], (3 * hidden,), s),
        "w_dec": u(ks[5], (out, hidden), s),
        "b_dec": u(ks[6], (out,), s),
    }


if __name__ == "__main__":
    # Small shapes consistent with the module's forward / train loop.
    batch = 8
    vocab = 16          # input_size
    embed = 32          # embedding_size
    hidden_size = 32    # hidden_size
    out_size = 16       # output_size
    seq_len = 8         # chunk of timesteps (chunk_len-style loop, fused)
    temperature = 0.8

    key = jax.random.PRNGKey(0)
    k_tok, k_par = jax.random.split(key)

    params = _init_params(k_par, vocab, embed, hidden_size, out_size)
    prepped = prepare_params(params, temperature=temperature)

    token_seq = jax.random.randint(k_tok, (seq_len, batch), 0, vocab,
                                   dtype=jnp.int32)
    hidden = jnp.zeros((1, batch, hidden_size), jnp.float32)   # init_hidden()

    # Fused multi-step forward (one pallas_call for the whole chunk).
    logits_seq, h_final = char_rnn_forward_seq(token_seq, hidden, prepped)
    jax.block_until_ready((logits_seq, h_final))

    ref_logits_seq, ref_h_final = _reference_forward_seq(
        token_seq, hidden, params, temperature=temperature)
    assert jnp.allclose(logits_seq, ref_logits_seq, atol=1e-4, rtol=1e-4)
    assert jnp.allclose(h_final, ref_h_final, atol=1e-4, rtol=1e-4)

    # Single-step call mirroring CharRNN.forward exactly (T == 1).
    logits1, h1 = char_rnn_forward(token_seq[0], hidden, prepped)
    jax.block_until_ready((logits1, h1))
    assert jnp.allclose(logits1, ref_logits_seq[0], atol=1e-4, rtol=1e-4)

    print("KERNEL_OK")
</pallas_src>

<mosaic_0001>
module attributes {stable_mosaic.version = 11 : i64} {
  func.func @_char_rnn_gru_chunk_kernel(%arg0: i32, %arg1: memref<8x8x16xf32, #tpu.memory_space<vmem>>, %arg2: memref<8x32xf32, #tpu.memory_space<vmem>>, %arg3: memref<16x128xf32, #tpu.memory_space<vmem>>, %arg4: memref<32x128xf32, #tpu.memory_space<vmem>>, %arg5: memref<1x128xf32, #tpu.memory_space<vmem>>, %arg6: memref<32x128xf32, #tpu.memory_space<vmem>>, %arg7: memref<1x128xf32, #tpu.memory_space<vmem>>, %arg8: memref<8x8x128xf32, #tpu.memory_space<vmem>>, %arg9: memref<8x32xf32, #tpu.memory_space<vmem>>) attributes {dimension_semantics = [#tpu.dimension_semantics<arbitrary>], iteration_bounds = array<i64: 1>, scalar_prefetch = 0 : i64, scratch_operands = 0 : i64, tpu.core_type = #tpu.core_type<tc>, window_params = [{pipeline_mode = #tpu.pipeline_mode<synchronous>, transform_indices = @transform_0, window_bounds = array<i64: 8, 8, 16>}, {pipeline_mode = #tpu.pipeline_mode<synchronous>, transform_indices = @transform_1, window_bounds = array<i64: 8, 32>}, {pipeline_mode = #tpu.pipeline_mode<synchronous>, transform_indices = @transform_2, window_bounds = array<i64: 16, 128>}, {pipeline_mode = #tpu.pipeline_mode<synchronous>, transform_indices = @transform_3, window_bounds = array<i64: 32, 128>}, {pipeline_mode = #tpu.pipeline_mode<synchronous>, transform_indices = @transform_4, window_bounds = array<i64: 1, 128>}, {pipeline_mode = #tpu.pipeline_mode<synchronous>, transform_indices = @transform_5, window_bounds = array<i64: 32, 128>}, {pipeline_mode = #tpu.pipeline_mode<synchronous>, transform_indices = @transform_6, window_bounds = array<i64: 1, 128>}, {pipeline_mode = #tpu.pipeline_mode<synchronous>, transform_indices = @transform_7, window_bounds = array<i64: 8, 8, 128>}, {pipeline_mode = #tpu.pipeline_mode<synchronous>, transform_indices = @transform_8, window_bounds = array<i64: 8, 32>}]} {
    %c0 = arith.constant 0 : index
    %c0_0 = arith.constant 0 : index
    %0 = vector.load %arg3[%c0, %c0_0] : memref<16x128xf32, #tpu.memory_space<vmem>>, vector<16x128xf32>
    %c0_1 = arith.constant 0 : index
    %c0_2 = arith.constant 0 : index
    %1 = vector.load %arg4[%c0_1, %c0_2] : memref<32x128xf32, #tpu.memory_space<vmem>>, vector<32x128xf32>
    %c0_3 = arith.constant 0 : index
    %c0_4 = arith.constant 0 : index
    %2 = vector.load %arg5[%c0_3, %c0_4] : memref<1x128xf32, #tpu.memory_space<vmem>>, vector<1x128xf32>
    %c0_5 = arith.constant 0 : index
    %c0_6 = arith.constant 0 : index
    %3 = vector.load %arg6[%c0_5, %c0_6] : memref<32x128xf32, #tpu.memory_space<vmem>>, vector<32x128xf32>
    %c0_7 = arith.constant 0 : index
    %c0_8 = arith.constant 0 : index
    %4 = vector.load %arg7[%c0_7, %c0_8] : memref<1x128xf32, #tpu.memory_space<vmem>>, vector<1x128xf32>
    %c0_9 = arith.constant 0 : index
    %c0_10 = arith.constant 0 : index
    %5 = vector.load %arg2[%c0_9, %c0_10] : memref<8x32xf32, #tpu.memory_space<vmem>>, vector<8x32xf32>
    %c0_11 = arith.constant 0 : index
    %c0_12 = arith.constant 0 : index
    %c0_13 = arith.constant 0 : index
    %6 = vector.load %arg1[%c0_11, %c0_12, %c0_13] : memref<8x8x16xf32, #tpu.memory_space<vmem>>, vector<1x8x16xf32>
    %7 = vector.shape_cast %6 : vector<1x8x16xf32> to vector<8x16xf32>
    %cst = arith.constant dense<0.000000e+00> : vector<8x128xf32>
    %8 = tpu.matmul %7, %0, %cst {dimension_numbers = #tpu.dot_dimension_numbers<[1], [0], [0], [1], [0, 0, 1, 1], [], []>} : vector<8x16xf32>, vector<16x128xf32>, vector<8x128xf32> -> vector<8x128xf32>
    %cst_14 = arith.constant dense<0.000000e+00> : vector<8x128xf32>
    %9 = tpu.matmul %5, %1, %cst_14 {dimension_numbers = #tpu.dot_dimension_numbers<[1], [0], [0], [1], [0, 0, 1, 1], [], []>} : vector<8x32xf32>, vector<32x128xf32>, vector<8x128xf32> -> vector<8x128xf32>
    %10 = arith.addf %8, %9 : vector<8x128xf32>
    %11 = vector.broadcast %2 : vector<1x128xf32> to vector<8x128xf32>
    %12 = arith.addf %10, %11 : vector<8x128xf32>
    %13 = vector.extract_strided_slice %12 {offsets = [0, 0], sizes = [8, 64], strides = [1, 1]} : vector<8x128xf32> to vector<8x64xf32>
    %14 = arith.negf %13 : vector<8x64xf32>
    %15 = math.exp %14 : vector<8x64xf32>
    %cst_15 = arith.constant 1.000000e+00 : f32
    %16 = vector.broadcast %cst_15 : f32 to vector<8x64xf32>
    %17 = arith.addf %16, %15 : vector<8x64xf32>
    %18 = arith.divf %16, %17 : vector<8x64xf32>
    %19 = vector.extract_strided_slice %18 {offsets = [0, 0], sizes = [8, 32], strides = [1, 1]} : vector<8x64xf32> to vector<8x32xf32>
    %20 = vector.extract_strided_slice %18 {offsets = [0, 32], sizes = [8, 32], strides = [1, 1]} : vector<8x64xf32> to vector<8x32xf32>
    %21 = vector.extract_strided_slice %12 {offsets = [0, 64], sizes = [8, 32], strides = [1, 1]} : vector<8x128xf32> to vector<8x32xf32>
    %22 = vector.extract_strided_slice %12 {offsets = [0, 96], sizes = [8, 32], strides = [1, 1]} : vector<8x128xf32> to vector<8x32xf32>
    %23 = arith.mulf %19, %22 : vector<8x32xf32>
    %24 = arith.addf %21, %23 : vector<8x32xf32>
    %25 = math.tanh %24 : vector<8x32xf32>
    %cst_16 = arith.constant 1.000000e+00 : f32
    %26 = vector.broadcast %cst_16 : f32 to vector<8x32xf32>
    %27 = arith.subf %26, %20 : vector<8x32xf32>
    %28 = arith.mulf %27, %25 : vector<8x32xf32>
    %29 = arith.mulf %20, %5 : vector<8x32xf32>
    %30 = arith.addf %28, %29 : vector<8x32xf32>
    %cst_17 = arith.constant dense<0.000000e+00> : vector<8x128xf32>
    %31 = tpu.matmul %30, %3, %cst_17 {dimension_numbers = #tpu.dot_dimension_numbers<[1], [0], [0], [1], [0, 0, 1, 1], [], []>} : vector<8x32xf32>, vector<32x128xf32>, vector<8x128xf32> -> vector<8x128xf32>
    %32 = vector.broadcast %4 : vector<1x128xf32> to vector<8x128xf32>
    %33 = arith.addf %31, %32 : vector<8x128xf32>
    %c0_18 = arith.constant 0 : index
    %c0_19 = arith.constant 0 : index
    %c0_20 = arith.constant 0 : index
    %34 = vector.load %arg8[%c0_18, %c0_19, %c0_20] : memref<8x8x128xf32, #tpu.memory_space<vmem>>, vector<1x8x128xf32>
    %35 = vector.shape_cast %34 : vector<1x8x128xf32> to vector<8x128xf32>
    %36 = vector.shape_cast %33 : vector<8x128xf32> to vector<1x8x128xf32>
    tpu.vector_store %arg8[%c0_18, %c0_19, %c0_20], %36 {strides = array<i32>} : memref<8x8x128xf32, #tpu.memory_space<vmem>>, vector<1x8x128xf32>,
    %c1 = arith.constant 1 : index
    %c0_21 = arith.constant 0 : index
    %c0_22 = arith.constant 0 : index
    %37 = vector.load %arg1[%c1, %c0_21, %c0_22] : memref<8x8x16xf32, #tpu.memory_space<vmem>>, vector<1x8x16xf32>
    %38 = vector.shape_cast %37 : vector<1x8x16xf32> to vector<8x16xf32>
    %cst_23 = arith.constant dense<0.000000e+00> : vector<8x128xf32>
    %39 = tpu.matmul %38, %0, %cst_23 {dimension_numbers = #tpu.dot_dimension_numbers<[1], [0], [0], [1], [0, 0, 1, 1], [], []>} : vector<8x16xf32>, vector<16x128xf32>, vector<8x128xf32> -> vector<8x128xf32>
    %cst_24 = arith.constant dense<0.000000e+00> : vector<8x128xf32>
    %40 = tpu.matmul %30, %1, %cst_24 {dimension_numbers = #tpu.dot_dimension_numbers<[1], [0], [0], [1], [0, 0, 1, 1], [], []>} : vector<8x32xf32>, vector<32x128xf32>, vector<8x128xf32> -> vector<8x128xf32>
    %41 = arith.addf %39, %40 : vector<8x128xf32>
    %42 = vector.broadcast %2 : vector<1x128xf32> to vector<8x128xf32>
    %43 = arith.addf %41, %42 : vector<8x128xf32>
    %44 = vector.extract_strided_slice %43 {offsets = [0, 0], sizes = [8, 64], strides = [1, 1]} : vector<8x128xf32> to vector<8x64xf32>
    %45 = arith.negf %44 : vector<8x64xf32>
    %46 = math.exp %45 : vector<8x64xf32>
    %cst_25 = arith.constant 1.000000e+00 : f32
    %47 = vector.broadcast %cst_25 : f32 to vector<8x64xf32>
    %48 = arith.addf %47, %46 : vector<8x64xf32>
    %49 = arith.divf %47, %48 : vector<8x64xf32>
    %50 = vector.extract_strided_slice %49 {offsets = [0, 0], sizes = [8, 32], strides = [1, 1]} : vector<8x64xf32> to vector<8x32xf32>
    %51 = vector.extract_strided_slice %49 {offsets = [0, 32], sizes = [8, 32], strides = [1, 1]} : vector<8x64xf32> to vector<8x32xf32>
    %52 = vector.extract_strided_slice %43 {offsets = [0, 64], sizes = [8, 32], strides = [1, 1]} : vector<8x128xf32> to vector<8x32xf32>
    %53 = vector.extract_strided_slice %43 {offsets = [0, 96], sizes = [8, 32], strides = [1, 1]} : vector<8x128xf32> to vector<8x32xf32>
    %54 = arith.mulf %50, %53 : vector<8x32xf32>
    %55 = arith.addf %52, %54 : vector<8x32xf32>
    %56 = math.tanh %55 : vector<8x32xf32>
    %cst_26 = arith.constant 1.000000e+00 : f32
    %57 = vector.broadcast %cst_26 : f32 to vector<8x32xf32>
    %58 = arith.subf %57, %51 : vector<8x32xf32>
    %59 = arith.mulf %58, %56 : vector<8x32xf32>
    %60 = arith.mulf %51, %30 : vector<8x32xf32>
    %61 = arith.addf %59, %60 : vector<8x32xf32>
    %cst_27 = arith.constant dense<0.000000e+00> : vector<8x128xf32>
    %62 = tpu.matmul %61, %3, %cst_27 {dimension_numbers = #tpu.dot_dimension_numbers<[1], [0], [0], [1], [0, 0, 1, 1], [], []>} : vector<8x32xf32>, vector<32x128xf32>, vector<8x128xf32> -> vector<8x128xf32>
    %63 = vector.broadcast %4 : vector<1x128xf32> to vector<8x128xf32>
    %64 = arith.addf %62, %63 : vector<8x128xf32>
    %c1_28 = arith.constant 1 : index
    %c0_29 = arith.constant 0 : index
    %c0_30 = arith.constant 0 : index
    %65 = vector.load %arg8[%c1_28, %c0_29, %c0_30] : memref<8x8x128xf32, #tpu.memory_space<vmem>>, vector<1x8x128xf32>
    %66 = vector.shape_cast %65 : vector<1x8x128xf32> to vector<8x128xf32>
    %67 = vector.shape_cast %64 : vector<8x128xf32> to vector<1x8x128xf32>
    tpu.vector_store %arg8[%c1_28, %c0_29, %c0_30], %67 {strides = array<i32>} : memref<8x8x128xf32, #tpu.memory_space<vmem>>, vector<1x8x128xf32>,
    %c2 = arith.constant 2 : index
    %c0_31 = arith.constant 0 : index
    %c0_32 = arith.constant 0 : index
    %68 = vector.load %arg1[%c2, %c0_31, %c0_32] : memref<8x8x16xf32, #tpu.memory_space<vmem>>, vector<1x8x16xf32>
    %69 = vector.shape_cast %68 : vector<1x8x16xf32> to vector<8x16xf32>
    %cst_33 = arith.constant dense<0.000000e+00> : vector<8x128xf32>
    %70 = tpu.matmul %69, %0, %cst_33 {dimension_numbers = #tpu.dot_dimension_numbers<[1], [0], [0], [1], [0, 0, 1, 1], [], []>} : vector<8x16xf32>, vector<16x128xf32>, vector<8x128xf32> -> vector<8x128xf32>
    %cst_34 = arith.constant dense<0.000000e+00> : vector<8x128xf32>
    %71 = tpu.matmul %61, %1, %cst_34 {dimension_numbers = #tpu.dot_dimension_numbers<[1], [0], [0], [1], [0, 0, 1, 1], [], []>} : vector<8x32xf32>, vector<32x128xf32>, vector<8x128xf32> -> vector<8x128xf32>
    %72 = arith.addf %70, %71 : vector<8x128xf32>
    %73 = vector.broadcast %2 : vector<1x128xf32> to vector<8x128xf32>
    %74 = arith.addf %72, %73 : vector<8x128xf32>
    %75 = vector.extract_strided_slice %74 {offsets = [0, 0], sizes = [8, 64], strides = [1, 1]} : vector<8x128xf32> to vector<8x64xf32>
    %76 = arith.negf %75 : vector<8x64xf32>
    %77 = math.exp %76 : vector<8x64xf32>
    %cst_35 = arith.constant 1.000000e+00 : f32
    %78 = vector.broadcast %cst_35 : f32 to vector<8x64xf32>
    %79 = arith.addf %78, %77 : vector<8x64xf32>
    %80 = arith.divf %78, %79 : vector<8x64xf32>
    %81 = vector.extract_strided_slice %80 {offsets = [0, 0], sizes = [8, 32], strides = [1, 1]} : vector<8x64xf32> to vector<8x32xf32>
    %82 = vector.extract_strided_slice %80 {offsets = [0, 32], sizes = [8, 32], strides = [1, 1]} : vector<8x64xf32> to vector<8x32xf32>
    %83 = vector.extract_strided_slice %74 {offsets = [0, 64], sizes = [8, 32], strides = [1, 1]} : vector<8x128xf32> to vector<8x32xf32>
    %84 = vector.extract_strided_slice %74 {offsets = [0, 96], sizes = [8, 32], strides = [1, 1]} : vector<8x128xf32> to vector<8x32xf32>
    %85 = arith.mulf %81, %84 : vector<8x32xf32>
    %86 = arith.addf %83, %85 : vector<8x32xf32>
    %87 = math.tanh %86 : vector<8x32xf32>
    %cst_36 = arith.constant 1.000000e+00 : f32
    %88 = vector.broadcast %cst_36 : f32 to vector<8x32xf32>
    %89 = arith.subf %88, %82 : vector<8x32xf32>
    %90 = arith.mulf %89, %87 : vector<8x32xf32>
    %91 = arith.mulf %82, %61 : vector<8x32xf32>
    %92 = arith.addf %90, %91 : vector<8x32xf32>
    %cst_37 = arith.constant dense<0.000000e+00> : vector<8x128xf32>
    %93 = tpu.matmul %92, %3, %cst_37 {dimension_numbers = #tpu.dot_dimension_numbers<[1], [0], [0], [1], [0, 0, 1, 1], [], []>} : vector<8x32xf32>, vector<32x128xf32>, vector<8x128xf32> -> vector<8x128xf32>
    %94 = vector.broadcast %4 : vector<1x128xf32> to vector<8x128xf32>
    %95 = arith.addf %93, %94 : vector<8x128xf32>
    %c2_38 = arith.constant 2 : index
    %c0_39 = arith.constant 0 : index
    %c0_40 = arith.constant 0 : index
    %96 = vector.load %arg8[%c2_38, %c0_39, %c0_40] : memref<8x8x128xf32, #tpu.memory_space<vmem>>, vector<1x8x128xf32>
    %97 = vector.shape_cast %96 : vector<1x8x128xf32> to vector<8x128xf32>
    %98 = vector.shape_cast %95 : vector<8x128xf32> to vector<1x8x128xf32>
    tpu.vector_store %arg8[%c2_38, %c0_39, %c0_40], %98 {strides = array<i32>} : memref<8x8x128xf32, #tpu.memory_space<vmem>>, vector<1x8x128xf32>,
    %c3 = arith.constant 3 : index
    %c0_41 = arith.constant 0 : index
    %c0_42 = arith.constant 0 : index
    %99 = vector.load %arg1[%c3, %c0_41, %c0_42] : memref<8x8x16xf32, #tpu.memory_space<vmem>>, vector<1x8x16xf32>
    %100 = vector.shape_cast %99 : vector<1x8x16xf32> to vector<8x16xf32>
    %cst_43 = arith.constant dense<0.000000e+00> : vector<8x128xf32>
    %101 = tpu.matmul %100, %0, %cst_43 {dimension_numbers = #tpu.dot_dimension_numbers<[1], [0], [0], [1], [0, 0, 1, 1], [], []>} : vector<8x16xf32>, vector<16x128xf32>, vector<8x128xf32> -> vector<8x128xf32>
    %cst_44 = arith.constant dense<0.000000e+00> : vector<8x128xf32>
    %102 = tpu.matmul %92, %1, %cst_44 {dimension_numbers = #tpu.dot_dimension_numbers<[1], [0], [0], [1], [0, 0, 1, 1], [], []>} : vector<8x32xf32>, vector<32x128xf32>, vector<8x128xf32> -> vector<8x128xf32>
    %103 = arith.addf %101, %102 : vector<8x128xf32>
    %104 = vector.broadcast %2 : vector<1x128xf32> to vector<8x128xf32>
    %105 = arith.addf %103, %104 : vector<8x128xf32>
    %106 = vector.extract_strided_slice %105 {offsets = [0, 0], sizes = [8, 64], strides = [1, 1]} : vector<8x128xf32> to vector<8x64xf32>
    %107 = arith.negf %106 : vector<8x64xf32>
    %108 = math.exp %107 : vector<8x64xf32>
    %cst_45 = arith.constant 1.000000e+00 : f32
    %109 = vector.broadcast %cst_45 : f32 to vector<8x64xf32>
    %110 = arith.addf %109, %108 : vector<8x64xf32>
    %111 = arith.divf %109, %110 : vector<8x64xf32>
    %112 = vector.extract_strided_slice %111 {offsets = [0, 0], sizes = [8, 32], strides = [1, 1]} : vector<8x64xf32> to vector<8x32xf32>
    %113 = vector.extract_strided_slice %111 {offsets = [0, 32], sizes = [8, 32], strides = [1, 1]} : vector<8x64xf32> to vector<8x32xf32>
    %114 = vector.extract_strided_slice %105 {offsets = [0, 64], sizes = [8, 32], strides = [1, 1]} : vector<8x128xf32> to vector<8x32xf32>
    %115 = vector.extract_strided_slice %105 {offsets = [0, 96], sizes = [8, 32], strides = [1, 1]} : vector<8x128xf32> to vector<8x32xf32>
    %116 = arith.mulf %112, %115 : vector<8x32xf32>
    %117 = arith.addf %114, %116 : vector<8x32xf32>
    %118 = math.tanh %117 : vector<8x32xf32>
    %cst_46 = arith.constant 1.000000e+00 : f32
    %119 = vector.broadcast %cst_46 : f32 to vector<8x32xf32>
    %120 = arith.subf %119, %113 : vector<8x32xf32>
    %121 = arith.mulf %120, %118 : vector<8x32xf32>
    %122 = arith.mulf %113, %92 : vector<8x32xf32>
    %123 = arith.addf %121, %122 : vector<8x32xf32>
    %cst_47 = arith.constant dense<0.000000e+00> : vector<8x128xf32>
    %124 = tpu.matmul %123, %3, %cst_47 {dimension_numbers = #tpu.dot_dimension_numbers<[1], [0], [0], [1], [0, 0, 1, 1], [], []>} : vector<8x32xf32>, vector<32x128xf32>, vector<8x128xf32> -> vector<8x128xf32>
    %125 = vector.broadcast %4 : vector<1x128xf32> to vector<8x128xf32>
    %126 = arith.addf %124, %125 : vector<8x128xf32>
    %c3_48 = arith.constant 3 : index
    %c0_49 = arith.constant 0 : index
    %c0_50 = arith.constant 0 : index
    %127 = vector.load %arg8[%c3_48, %c0_49, %c0_50] : memref<8x8x128xf32, #tpu.memory_space<vmem>>, vector<1x8x128xf32>
    %128 = vector.shape_cast %127 : vector<1x8x128xf32> to vector<8x128xf32>
    %129 = vector.shape_cast %126 : vector<8x128xf32> to vector<1x8x128xf32>
    tpu.vector_store %arg8[%c3_48, %c0_49, %c0_50], %129 {strides = array<i32>} : memref<8x8x128xf32, #tpu.memory_space<vmem>>, vector<1x8x128xf32>,
    %c4 = arith.constant 4 : index
    %c0_51 = arith.constant 0 : index
    %c0_52 = arith.constant 0 : index
    %130 = vector.load %arg1[%c4, %c0_51, %c0_52] : memref<8x8x16xf32, #tpu.memory_space<vmem>>, vector<1x8x16xf32>
    %131 = vector.shape_cast %130 : vector<1x8x16xf32> to vector<8x16xf32>
    %cst_53 = arith.constant dense<0.000000e+00> : vector<8x128xf32>
    %132 = tpu.matmul %131, %0, %cst_53 {dimension_numbers = #tpu.dot_dimension_numbers<[1], [0], [0], [1], [0, 0, 1, 1], [], []>} : vector<8x16xf32>, vector<16x128xf32>, vector<8x128xf32> -> vector<8x128xf32>
    %cst_54 = arith.constant dense<0.000000e+00> : vector<8x128xf32>
    %133 = tpu.matmul %123, %1, %cst_54 {dimension_numbers = #tpu.dot_dimension_numbers<[1], [0], [0], [1], [0, 0, 1, 1], [], []>} : vector<8x32xf32>, vector<32x128xf32>, vector<8x128xf32> -> vector<8x128xf32>
    %134 = arith.addf %132, %133 : vector<8x128xf32>
    %135 = vector.broadcast %2 : vector<1x128xf32> to vector<8x128xf32>
    %136 = arith.addf %134, %135 : vector<8x128xf32>
    %137 = vector.extract_strided_slice %136 {offsets = [0, 0], sizes = [8, 64], strides = [1, 1]} : vector<8x128xf32> to vector<8x64xf32>
    %138 = arith.negf %137 : vector<8x64xf32>
    %139 = math.exp %138 : vector<8x64xf32>
    %cst_55 = arith.constant 1.000000e+00 : f32
    %140 = vector.broadcast %cst_55 : f32 to vector<8x64xf32>
    %141 = arith.addf %140, %139 : vector<8x64xf32>
    %142 = arith.divf %140, %141 : vector<8x64xf32>
    %143 = vector.extract_strided_slice %142 {offsets = [0, 0], sizes = [8, 32], strides = [1, 1]} : vector<8x64xf32> to vector<8x32xf32>
    %144 = vector.extract_strided_slice %142 {offsets = [0, 32], sizes = [8, 32], strides = [1, 1]} : vector<8x64xf32> to vector<8x32xf32>
    %145 = vector.extract_strided_slice %136 {offsets = [0, 64], sizes = [8, 32], strides = [1, 1]} : vector<8x128xf32> to vector<8x32xf32>
    %146 = vector.extract_strided_slice %136 {offsets = [0, 96], sizes = [8, 32], strides = [1, 1]} : vector<8x128xf32> to vector<8x32xf32>
    %147 = arith.mulf %143, %146 : vector<8x32xf32>
    %148 = arith.addf %145, %147 : vector<8x32xf32>
    %149 = math.tanh %148 : vector<8x32xf32>
    %cst_56 = arith.constant 1.000000e+00 : f32
    %150 = vector.broadcast %cst_56 : f32 to vector<8x32xf32>
    %151 = arith.subf %150, %144 : vector<8x32xf32>
    %152 = arith.mulf %151, %149 : vector<8x32xf32>
    %153 = arith.mulf %144, %123 : vector<8x32xf32>
    %154 = arith.addf %152, %153 : vector<8x32xf32>
    %cst_57 = arith.constant dense<0.000000e+00> : vector<8x128xf32>
    %155 = tpu.matmul %154, %3, %cst_57 {dimension_numbers = #tpu.dot_dimension_numbers<[1], [0], [0], [1], [0, 0, 1, 1], [], []>} : vector<8x32xf32>, vector<32x128xf32>, vector<8x128xf32> -> vector<8x128xf32>
    %156 = vector.broadcast %4 : vector<1x128xf32> to vector<8x128xf32>
    %157 = arith.addf %155, %156 : vector<8x128xf32>
    %c4_58 = arith.constant 4 : index
    %c0_59 = arith.constant 0 : index
    %c0_60 = arith.constant 0 : index
    %158 = vector.load %arg8[%c4_58, %c0_59, %c0_60] : memref<8x8x128xf32, #tpu.memory_space<vmem>>, vector<1x8x128xf32>
    %159 = vector.shape_cast %158 : vector<1x8x128xf32> to vector<8x128xf32>
    %160 = vector.shape_cast %157 : vector<8x128xf32> to vector<1x8x128xf32>
    tpu.vector_store %arg8[%c4_58, %c0_59, %c0_60], %160 {strides = array<i32>} : memref<8x8x128xf32, #tpu.memory_space<vmem>>, vector<1x8x128xf32>,
    %c5 = arith.constant 5 : index
    %c0_61 = arith.constant 0 : index
    %c0_62 = arith.constant 0 : index
    %161 = vector.load %arg1[%c5, %c0_61, %c0_62] : memref<8x8x16xf32, #tpu.memory_space<vmem>>, vector<1x8x16xf32>
    %162 = vector.shape_cast %161 : vector<1x8x16xf32> to vector<8x16xf32>
    %cst_63 = arith.constant dense<0.000000e+00> : vector<8x128xf32>
    %163 = tpu.matmul %162, %0, %cst_63 {dimension_numbers = #tpu.dot_dimension_numbers<[1], [0], [0], [1], [0, 0, 1, 1], [], []>} : vector<8x16xf32>, vector<16x128xf32>, vector<8x128xf32> -> vector<8x128xf32>
    %cst_64 = arith.constant dense<0.000000e+00> : vector<8x128xf32>
    %164 = tpu.matmul %154, %1, %cst_64 {dimension_numbers = #tpu.dot_dimension_numbers<[1], [0], [0], [1], [0, 0, 1, 1], [], []>} : vector<8x32xf32>, vector<32x128xf32>, vector<8x128xf32> -> vector<8x128xf32>
    %165 = arith.addf %163, %164 : vector<8x128xf32>
    %166 = vector.broadcast %2 : vector<1x128xf32> to vector<8x128xf32>
    %167 = arith.addf %165, %166 : vector<8x128xf32>
    %168 = vector.extract_strided_slice %167 {offsets = [0, 0], sizes = [8, 64], strides = [1, 1]} : vector<8x128xf32> to vector<8x64xf32>
    %169 = arith.negf %168 : vector<8x64xf32>
    %170 = math.exp %169 : vector<8x64xf32>
    %cst_65 = arith.constant 1.000000e+00 : f32
    %171 = vector.broadcast %cst_65 : f32 to vector<8x64xf32>
    %172 = arith.addf %171, %170 : vector<8x64xf32>
    %173 = arith.divf %171, %172 : vector<8x64xf32>
    %174 = vector.extract_strided_slice %173 {offsets = [0, 0], sizes = [8, 32], strides = [1, 1]} : vector<8x64xf32> to vector<8x32xf32>
    %175 = vector.extract_strided_slice %173 {offsets = [0, 32], sizes = [8, 32], strides = [1, 1]} : vector<8x64xf32> to vector<8x32xf32>
    %176 = vector.extract_strided_slice %167 {offsets = [0, 64], sizes = [8, 32], strides = [1, 1]} : vector<8x128xf32> to vector<8x32xf32>
    %177 = vector.extract_strided_slice %167 {offsets = [0, 96], sizes = [8, 32], strides = [1, 1]} : vector<8x128xf32> to vector<8x32xf32>
    %178 = arith.mulf %174, %177 : vector<8x32xf32>
    %179 = arith.addf %176, %178 : vector<8x32xf32>
    %180 = math.tanh %179 : vector<8x32xf32>
    %cst_66 = arith.constant 1.000000e+00 : f32
    %181 = vector.broadcast %cst_66 : f32 to vector<8x32xf32>
    %182 = arith.subf %181, %175 : vector<8x32xf32>
    %183 = arith.mulf %182, %180 : vector<8x32xf32>
    %184 = arith.mulf %175, %154 : vector<8x32xf32>
    %185 = arith.addf %183, %184 : vector<8x32xf32>
    %cst_67 = arith.constant dense<0.000000e+00> : vector<8x128xf32>
    %186 = tpu.matmul %185, %3, %cst_67 {dimension_numbers = #tpu.dot_dimension_numbers<[1], [0], [0], [1], [0, 0, 1, 1], [], []>} : vector<8x32xf32>, vector<32x128xf32>, vector<8x128xf32> -> vector<8x128xf32>
    %187 = vector.broadcast %4 : vector<1x128xf32> to vector<8x128xf32>
    %188 = arith.addf %186, %187 : vector<8x128xf32>
    %c5_68 = arith.constant 5 : index
    %c0_69 = arith.constant 0 : index
    %c0_70 = arith.constant 0 : index
    %189 = vector.load %arg8[%c5_68, %c0_69, %c0_70] : memref<8x8x128xf32, #tpu.memory_space<vmem>>, vector<1x8x128xf32>
    %190 = vector.shape_cast %189 : vector<1x8x128xf32> to vector<8x128xf32>
    %191 = vector.shape_cast %188 : vector<8x128xf32> to vector<1x8x128xf32>
    tpu.vector_store %arg8[%c5_68, %c0_69, %c0_70], %191 {strides = array<i32>} : memref<8x8x128xf32, #tpu.memory_space<vmem>>, vector<1x8x128xf32>,
    %c6 = arith.constant 6 : index
    %c0_71 = arith.constant 0 : index
    %c0_72 = arith.constant 0 : index
    %192 = vector.load %arg1[%c6, %c0_71, %c0_72] : memref<8x8x16xf32, #tpu.memory_space<vmem>>, vector<1x8x16xf32>
    %193 = vector.shape_cast %192 : vector<1x8x16xf32> to vector<8x16xf32>
    %cst_73 = arith.constant dense<0.000000e+00> : vector<8x128xf32>
    %194 = tpu.matmul %193, %0, %cst_73 {dimension_numbers = #tpu.dot_dimension_numbers<[1], [0], [0], [1], [0, 0, 1, 1], [], []>} : vector<8x16xf32>, vector<16x128xf32>, vector<8x128xf32> -> vector<8x128xf32>
    %cst_74 = arith.constant dense<0.000000e+00> : vector<8x128xf32>
    %195 = tpu.matmul %185, %1, %cst_74 {dimension_numbers = #tpu.dot_dimension_numbers<[1], [0], [0], [1], [0, 0, 1, 1], [], []>} : vector<8x32xf32>, vector<32x128xf32>, vector<8x128xf32> -> vector<8x128xf32>
    %196 = arith.addf %194, %195 : vector<8x128xf32>
    %197 = vector.broadcast %2 : vector<1x128xf32> to vector<8x128xf32>
    %198 = arith.addf %196, %197 : vector<8x128xf32>
    %199 = vector.extract_strided_slice %198 {offsets = [0, 0], sizes = [8, 64], strides = [1, 1]} : vector<8x128xf32> to vector<8x64xf32>
    %200 = arith.negf %199 : vector<8x64xf32>
    %201 = math.exp %200 : vector<8x64xf32>
    %cst_75 = arith.constant 1.000000e+00 : f32
    %202 = vector.broadcast %cst_75 : f32 to vector<8x64xf32>
    %203 = arith.addf %202, %201 : vector<8x64xf32>
    %204 = arith.divf %202, %203 : vector<8x64xf32>
    %205 = vector.extract_strided_slice %204 {offsets = [0, 0], sizes = [8, 32], strides = [1, 1]} : vector<8x64xf32> to vector<8x32xf32>
    %206 = vector.extract_strided_slice %204 {offsets = [0, 32], sizes = [8, 32], strides = [1, 1]} : vector<8x64xf32> to vector<8x32xf32>
    %207 = vector.extract_strided_slice %198 {offsets = [0, 64], sizes = [8, 32], strides = [1, 1]} : vector<8x128xf32> to vector<8x32xf32>
    %208 = vector.extract_strided_slice %198 {offsets = [0, 96], sizes = [8, 32], strides = [1, 1]} : vector<8x128xf32> to vector<8x32xf32>
    %209 = arith.mulf %205, %208 : vector<8x32xf32>
    %210 = arith.addf %207, %209 : vector<8x32xf32>
    %211 = math.tanh %210 : vector<8x32xf32>
    %cst_76 = arith.constant 1.000000e+00 : f32
    %212 = vector.broadcast %cst_76 : f32 to vector<8x32xf32>
    %213 = arith.subf %212, %206 : vector<8x32xf32>
    %214 = arith.mulf %213, %211 : vector<8x32xf32>
    %215 = arith.mulf %206, %185 : vector<8x32xf32>
    %216 = arith.addf %214, %215 : vector<8x32xf32>
    %cst_77 = arith.constant dense<0.000000e+00> : vector<8x128xf32>
    %217 = tpu.matmul %216, %3, %cst_77 {dimension_numbers = #tpu.dot_dimension_numbers<[1], [0], [0], [1], [0, 0, 1, 1], [], []>} : vector<8x32xf32>, vector<32x128xf32>, vector<8x128xf32> -> vector<8x128xf32>
    %218 = vector.broadcast %4 : vector<1x128xf32> to vector<8x128xf32>
    %219 = arith.addf %217, %218 : vector<8x128xf32>
    %c6_78 = arith.constant 6 : index
    %c0_79 = arith.constant 0 : index
    %c0_80 = arith.constant 0 : index
    %220 = vector.load %arg8[%c6_78, %c0_79, %c0_80] : memref<8x8x128xf32, #tpu.memory_space<vmem>>, vector<1x8x128xf32>
    %221 = vector.shape_cast %220 : vector<1x8x128xf32> to vector<8x128xf32>
    %222 = vector.shape_cast %219 : vector<8x128xf32> to vector<1x8x128xf32>
    tpu.vector_store %arg8[%c6_78, %c0_79, %c0_80], %222 {strides = array<i32>} : memref<8x8x128xf32, #tpu.memory_space<vmem>>, vector<1x8x128xf32>,
    %c7 = arith.constant 7 : index
    %c0_81 = arith.constant 0 : index
    %c0_82 = arith.constant 0 : index
    %223 = vector.load %arg1[%c7, %c0_81, %c0_82] : memref<8x8x16xf32, #tpu.memory_space<vmem>>, vector<1x8x16xf32>
    %224 = vector.shape_cast %223 : vector<1x8x16xf32> to vector<8x16xf32>
    %cst_83 = arith.constant dense<0.000000e+00> : vector<8x128xf32>
    %225 = tpu.matmul %224, %0, %cst_83 {dimension_numbers = #tpu.dot_dimension_numbers<[1], [0], [0], [1], [0, 0, 1, 1], [], []>} : vector<8x16xf32>, vector<16x128xf32>, vector<8x128xf32> -> vector<8x128xf32>
    %cst_84 = arith.constant dense<0.000000e+00> : vector<8x128xf32>
    %226 = tpu.matmul %216, %1, %cst_84 {dimension_numbers = #tpu.dot_dimension_numbers<[1], [0], [0], [1], [0, 0, 1, 1], [], []>} : vector<8x32xf32>, vector<32x128xf32>, vector<8x128xf32> -> vector<8x128xf32>
    %227 = arith.addf %225, %226 : vector<8x128xf32>
    %228 = vector.broadcast %2 : vector<1x128xf32> to vector<8x128xf32>
    %229 = arith.addf %227, %228 : vector<8x128xf32>
    %230 = vector.extract_strided_slice %229 {offsets = [0, 0], sizes = [8, 64], strides = [1, 1]} : vector<8x128xf32> to vector<8x64xf32>
    %231 = arith.negf %230 : vector<8x64xf32>
    %232 = math.exp %231 : vector<8x64xf32>
    %cst_85 = arith.constant 1.000000e+00 : f32
    %233 = vector.broadcast %cst_85 : f32 to vector<8x64xf32>
    %234 = arith.addf %233, %232 : vector<8x64xf32>
    %235 = arith.divf %233, %234 : vector<8x64xf32>
    %236 = vector.extract_strided_slice %235 {offsets = [0, 0], sizes = [8, 32], strides = [1, 1]} : vector<8x64xf32> to vector<8x32xf32>
    %237 = vector.extract_strided_slice %235 {offsets = [0, 32], sizes = [8, 32], strides = [1, 1]} : vector<8x64xf32> to vector<8x32xf32>
    %238 = vector.extract_strided_slice %229 {offsets = [0, 64], sizes = [8, 32], strides = [1, 1]} : vector<8x128xf32> to vector<8x32xf32>
    %239 = vector.extract_strided_slice %229 {offsets = [0, 96], sizes = [8, 32], strides = [1, 1]} : vector<8x128xf32> to vector<8x32xf32>
    %240 = arith.mulf %236, %239 : vector<8x32xf32>
    %241 = arith.addf %238, %240 : vector<8x32xf32>
    %242 = math.tanh %241 : vector<8x32xf32>
    %cst_86 = arith.constant 1.000000e+00 : f32
    %243 = vector.broadcast %cst_86 : f32 to vector<8x32xf32>
    %244 = arith.subf %243, %237 : vector<8x32xf32>
    %245 = arith.mulf %244, %242 : vector<8x32xf32>
    %246 = arith.mulf %237, %216 : vector<8x32xf32>
    %247 = arith.addf %245, %246 : vector<8x32xf32>
    %cst_87 = arith.constant dense<0.000000e+00> : vector<8x128xf32>
    %248 = tpu.matmul %247, %3, %cst_87 {dimension_numbers = #tpu.dot_dimension_numbers<[1], [0], [0], [1], [0, 0, 1, 1], [], []>} : vector<8x32xf32>, vector<32x128xf32>, vector<8x128xf32> -> vector<8x128xf32>
    %249 = vector.broadcast %4 : vector<1x128xf32> to vector<8x128xf32>
    %250 = arith.addf %248, %249 : vector<8x128xf32>
    %c7_88 = arith.constant 7 : index
    %c0_89 = arith.constant 0 : index
    %c0_90 = arith.constant 0 : index
    %251 = vector.load %arg8[%c7_88, %c0_89, %c0_90] : memref<8x8x128xf32, #tpu.memory_space<vmem>>, vector<1x8x128xf32>
    %252 = vector.shape_cast %251 : vector<1x8x128xf32> to vector<8x128xf32>
    %253 = vector.shape_cast %250 : vector<8x128xf32> to vector<1x8x128xf32>
    tpu.vector_store %arg8[%c7_88, %c0_89, %c0_90], %253 {strides = array<i32>} : memref<8x8x128xf32, #tpu.memory_space<vmem>>, vector<1x8x128xf32>,
    %c0_91 = arith.constant 0 : index
    %c0_92 = arith.constant 0 : index
    %254 = vector.load %arg9[%c0_91, %c0_92] : memref<8x32xf32, #tpu.memory_space<vmem>>, vector<8x32xf32>
    tpu.vector_store %arg9[%c0_91, %c0_92], %247 {strides = array<i32>} : memref<8x32xf32, #tpu.memory_space<vmem>>, vector<8x32xf32>,
    return
  }
  func.func @transform_0(%arg0: i32) -> (i32, i32, i32) {
    %c0_i32 = arith.constant 0 : i32
    %c0_i32_0 = arith.constant 0 : i32
    %c0_i32_1 = arith.constant 0 : i32
    %c0_i32_2 = arith.constant 0 : i32
    return %c0_i32, %c0_i32_0, %c0_i32_1 : i32, i32, i32
  }
  func.func @transform_1(%arg0: i32) -> (i32, i32) {
    %c0_i32 = arith.constant 0 : i32
    %c0_i32_0 = arith.constant 0 : i32
    %c0_i32_1 = arith.constant 0 : i32
    return %c0_i32, %c0_i32_0 : i32, i32
  }
  func.func @transform_2(%arg0: i32) -> (i32, i32) {
    %c0_i32 = arith.constant 0 : i32
    %c0_i32_0 = arith.constant 0 : i32
    %c0_i32_1 = arith.constant 0 : i32
    return %c0_i32, %c0_i32_0 : i32, i32
  }
  func.func @transform_3(%arg0: i32) -> (i32, i32) {
    %c0_i32 = arith.constant 0 : i32
    %c0_i32_0 = arith.constant 0 : i32
    %c0_i32_1 = arith.constant 0 : i32
    return %c0_i32, %c0_i32_0 : i32, i32
  }
  func.func @transform_4(%arg0: i32) -> (i32, i32) {
    %c0_i32 = arith.constant 0 : i32
    %c0_i32_0 = arith.constant 0 : i32
    %c0_i32_1 = arith.constant 0 : i32
    return %c0_i32, %c0_i32_0 : i32, i32
  }
  func.func @transform_5(%arg0: i32) -> (i32, i32) {
    %c0_i32 = arith.constant 0 : i32
    %c0_i32_0 = arith.constant 0 : i32
    %c0_i32_1 = arith.constant 0 : i32
    return %c0_i32, %c0_i32_0 : i32, i32
  }
  func.func @transform_6(%arg0: i32) -> (i32, i32) {
    %c0_i32 = arith.constant 0 : i32
    %c0_i32_0 = arith.constant 0 : i32
    %c0_i32_1 = arith.constant 0 : i32
    return %c0_i32, %c0_i32_0 : i32, i32
  }
  func.func @transform_7(%arg0: i32) -> (i32, i32, i32) {
    %c0_i32 = arith.constant 0 : i32
    %c0_i32_0 = arith.constant 0 : i32
    %c0_i32_1 = arith.constant 0 : i32
    %c0_i32_2 = arith.constant 0 : i32
    return %c0_i32, %c0_i32_0, %c0_i32_1 : i32, i32, i32
  }
  func.func @transform_8(%arg0: i32) -> (i32, i32) {
    %c0_i32 = arith.constant 0 : i32
    %c0_i32_0 = arith.constant 0 : i32
    %c0_i32_1 = arith.constant 0 : i32
    return %c0_i32, %c0_i32_0 : i32, i32
  }
}

</mosaic_0001>

<bundles_post_ra>
// kernel: tpu_custom_call.1
= control target key start
LH: loop header
LB: loop body
LE: loop exit
PB: predicated region body
PF: predicated region fallthrough
CT: control target
= control target key end

     0   :  { %14 = vsyncpa [#allocation3], 0  ;;  %s3244_s0 = inlined_call_operand.hbm [shape: f32[8,8,16], index: 0, kind: input, shape index: {}]   ;;  %s3245_s1 = inlined_call_operand.hbm [shape: f32[8,32], index: 1, kind: input, shape index: {}]   ;;  %s3246_s2 = inlined_call_operand.hbm [shape: f32[16,128], index: 2, kind: input, shape index: {}]   ;;  %s3247_s3 = inlined_call_operand.hbm [shape: f32[32,128], index: 3, kind: input, shape index: {}]   ;;  %s3248_s4 = inlined_call_operand.vmem [shape: f32[1,128], index: 4, kind: input, shape index: {}]   ;;  %s3249_s5 = inlined_call_operand.hbm [shape: f32[32,128], index: 5, kind: input, shape index: {}]   ;;  %s3250_s6 = inlined_call_operand.vmem [shape: f32[1,128], index: 6, kind: input, shape index: {}]   ;;  %s3251_s7 = inlined_call_operand.hbm [shape: f32[8,8,128], index: 7, kind: output, shape index: {0}]   ;;  %s3252_s8 = inlined_call_operand.hbm [shape: f32[8,32], index: 8, kind: output, shape index: {1}]  }
   0x1   :  { %15 = vsyncpa [#allocation6], 0 }
   0x2   :  { %16 = vsyncpa [#allocation9], 0 }
   0x3   :  { %17 = vsyncpa [#allocation4], 0 }
   0x4   :  { %18 = vsyncpa [#allocation13], 0  ;;  %s2863_s27 = smov [#allocation5]   ;;  %s2699_s9 = scalar_lea.hbm %s3245_s1, 128 }
   0x5   :  { %s37_s28 = sshll.u32 %s2863_s27, 4  ;;  %p2700_p0 = scmp.ne.s32.totalorder %s3245_s1, %s2699_s9  ;;  %s38_s28 = int_to_ptr.vmem [resolvable:$true] %s37_s28 }
   0x6   :  { %p2703_p1 = scmp.lt.u32.totalorder %s2699_s9, %s3245_s1 }
   0x8   :  { %p2705_p2 = pnand %p2703_p1, %p2700_p0 }
   0xa   :  { %2708 = shalt.err (!%p2705_p2)
}
   0xb   :  { %s2709_s14 = scalar_lea.vmem %s38_s28, 128  ;;  %p2714_p4 = scmp.lt.s32.totalorder %s38_s28, %s38_s28 }
   0xc   :  { %p2710_p3 = scmp.ne.s32.totalorder %s38_s28, %s2709_s14  ;;  %p2715_p5 = scmp.lt.s32.totalorder %s2709_s14, %s2709_s14 }
   0xe   :  { %p2716_p6 = por %p2715_p5, %p2714_p4 }
  0x10   :  { %p2717_p7 = pnand %p2716_p6, %p2710_p3 }
  0x12   :  { %2720 = shalt.err (!%p2717_p7)
}
  0x13   :  { %40 = dma.hbm_to_vmem [thread:$0]  %s3245_s1, 128, %s38_s28, [#allocation6]  }
  0x14   :  { %s2864_s17 = smov [#allocation8]   ;;  %s2865_s19 = smov [#allocation2]  }
  0x15   :  { %s58_s18 = sshll.u32 %s2864_s17, 4  ;;  %s24_s20 = sshll.u32 %s2865_s19, 4  ;;  %s59_s18 = int_to_ptr.vmem [resolvable:$true] %s58_s18  ;;  %s25_s20 = int_to_ptr.vmem [resolvable:$true] %s24_s20 }
  0x16   :  { %s2721_s23 = scalar_lea.hbm %s3247_s3, 512 }
  0x17   :  { %p2722_p8 = scmp.ne.s32.totalorder %s3247_s3, %s2721_s23  ;;  %p2725_p9 = scmp.lt.u32.totalorder %s2721_s23, %s3247_s3 }
  0x19   :  { %p2727_p10 = pnand %p2725_p9, %p2722_p8 }
  0x1b   :  { %2730 = shalt.err (!%p2727_p10)
}
  0x1c   :  { %s2731_s1 = scalar_lea.vmem %s59_s18, 512  ;;  %p2736_p12 = scmp.lt.s32.totalorder %s59_s18, %s59_s18 }
  0x1d   :  { %p2732_p11 = scmp.ne.s32.totalorder %s59_s18, %s2731_s1  ;;  %p2737_p13 = scmp.lt.s32.totalorder %s2731_s1, %s2731_s1 }
  0x1f   :  { %p2738_p0 = por %p2737_p13, %p2736_p12 }
  0x21   :  { %p2739_p1 = pnand %p2738_p0, %p2732_p11 }
  0x23   :  { %2742 = shalt.err (!%p2739_p1)
}
  0x24   :  { %s2866_s28 = smov 128   ;;  %s2867_s29 = smov 8  }
  0x25   :  { %64 = dma.hbm_to_vmem [thread:$0]  %s3247_s3, 512, %s59_s18, [#allocation9], %s2866_s28, %s2866_s28, %s2867_s29  }
  0x26   :  { %s2743_s12 = scalar_lea.hbm %s3244_s0, 1024 }
  0x27   :  { %p2744_p2 = scmp.ne.s32.totalorder %s3244_s0, %s2743_s12  ;;  %p2747_p3 = scmp.lt.u32.totalorder %s2743_s12, %s3244_s0 }
  0x29   :  { %p2749_p4 = pnand %p2747_p3, %p2744_p2 }
  0x2b   :  { %2752 = shalt.err (!%p2749_p4)
}
  0x2c   :  { %s2753_s17 = scalar_lea.vmem %s25_s20, 1024  ;;  %p2758_p6 = scmp.lt.s32.totalorder %s25_s20, %s25_s20 }
  0x2d   :  { %p2754_p5 = scmp.ne.s32.totalorder %s25_s20, %s2753_s17  ;;  %p2759_p7 = scmp.lt.s32.totalorder %s2753_s17, %s2753_s17 }
  0x2f   :  { %p2760_p8 = por %p2759_p7, %p2758_p6 }
  0x31   :  { %p2761_p9 = pnand %p2760_p8, %p2754_p5 }
  0x33   :  { %2764 = shalt.err (!%p2761_p9)
}
  0x34   :  { %30 = dma.hbm_to_vmem [thread:$0]  %s3244_s0, 1024, %s25_s20, [#allocation3], %s2866_s28, %s2866_s28, %s2867_s29  }
  0x35   :  { %s2868_s19 = smov [#allocation7]   ;;  %s2869_s22 = smov [#allocation10]  }
  0x36   :  { %s46_s21 = sshll.u32 %s2868_s19, 4  ;;  %s72_s23 = sshll.u32 %s2869_s22, 4  ;;  %s47_s21 = int_to_ptr.vmem [resolvable:$true] %s46_s21  ;;  %s73_s23 = int_to_ptr.vmem [resolvable:$true] %s72_s23 }
  0x37   :  { %s2765_s26 = scalar_lea.hbm %s3246_s2, 256 }
  0x38   :  { %p2766_p10 = scmp.ne.s32.totalorder %s3246_s2, %s2765_s26  ;;  %p2769_p11 = scmp.lt.u32.totalorder %s2765_s26, %s3246_s2 }
  0x3a   :  { %p2771_p12 = pnand %p2769_p11, %p2766_p10 }
  0x3c   :  { %2774 = shalt.err (!%p2771_p12)
}
  0x3d   :  { %s2775_s0 = scalar_lea.vmem %s47_s21, 256  ;;  %p2780_p0 = scmp.lt.s32.totalorder %s47_s21, %s47_s21 }
  0x3e   :  { %p2776_p13 = scmp.ne.s32.totalorder %s47_s21, %s2775_s0  ;;  %p2781_p1 = scmp.lt.s32.totalorder %s2775_s0, %s2775_s0 }
  0x40   :  { %p2782_p2 = por %p2781_p1, %p2780_p0 }
  0x42   :  { %p2783_p3 = pnand %p2782_p2, %p2776_p13 }
  0x44   :  { %2786 = shalt.err (!%p2783_p3)
}
  0x45   :  { %52 = dma.hbm_to_vmem [thread:$0]  %s3246_s2, 256, %s47_s21, [#allocation6], %s2866_s28, %s2866_s28, %s2867_s29  }
  0x46   :  { %s2787_s13 = scalar_lea.hbm %s3249_s5, 512 }
  0x47   :  { %p2788_p4 = scmp.ne.s32.totalorder %s3249_s5, %s2787_s13  ;;  %p2791_p5 = scmp.lt.u32.totalorder %s2787_s13, %s3249_s5 }
  0x49   :  { %p2793_p6 = pnand %p2791_p5, %p2788_p4 }
  0x4b   :  { %2796 = shalt.err (!%p2793_p6)
}
  0x4c   :  { %s2797_s3 = scalar_lea.vmem %s73_s23, 512  ;;  %p2802_p8 = scmp.lt.s32.totalorder %s73_s23, %s73_s23 }
  0x4d   :  { %p2798_p7 = scmp.ne.s32.totalorder %s73_s23, %s2797_s3  ;;  %p2803_p9 = scmp.lt.s32.totalorder %s2797_s3, %s2797_s3 }
  0x4f   :  { %p2804_p10 = por %p2803_p9, %p2802_p8 }
  0x51   :  { %p2805_p11 = pnand %p2804_p10, %p2798_p7 }
  0x53   :  { %2808 = shalt.err (!%p2805_p11)
}
  0x54   :  { %78 = dma.hbm_to_vmem [thread:$0]  %s3249_s5, 512, %s73_s23, [#allocation9], %s2866_s28, %s2866_s28, %s2867_s29  }
  0x55   :  { %2853 = dma.done.wait [#allocation3], 1024  }
  0x56   :  { %2854 = vsyncadd [#allocation3], 4294966272 }
  0x57   :  { %2855 = dma.done.wait [#allocation6], 384  }
  0x58   :  { %2856 = vsyncadd [#allocation6], 4294966912 }
  0x59   :  { %2857 = dma.done.wait [#allocation9], 1024  }
  0x5a   :  { %2858 = vsyncadd [#allocation9], 4294966272  ;;  %v2870_v0 = vmov 0.0|0.0   ;;  %vm2871_vm0 = vmmov 0   ;;  %v2872_v1 = vmov 0.0   ;;  %v98_v2 = vld [vmem:[#allocation8] sm:$0xff] }
  0x5b   :  { %2516 = vmatprep.subr.bf16.mxu0 %v2870_v0  ;;  %2522 = vmatprep.subr.bf16.mxu1 %v2870_v0  ;;  %v99_v3 = vld [vmem:[#allocation8 + $0x8] sm:$0xff]  ;;  %v96_v4 = vld [vmem:[#allocation7] sm:$0xff]  ;;  %v97_v6 = vld [vmem:[#allocation7 + $0x8] sm:$0xff]  ;;  %vm184_vm1 = vcmask 130048   ;;  %vm110_vm2 = vcmask 261120   ;;  %s2873_s21 = smov 32  }
  0x5c   :  { %2299 = vmatprep.mubr.msk.f32.mxu1 %vm2871_vm0, %v2872_v1  ;;  %2292 = vmatprep.mubr.msk.f32.mxu0 %vm2871_vm0, %v2872_v1  ;;  %v3001_v5 = vpack.c.bf16 %v99_v3, %v98_v2  ;;  %v100_v7 = vld [vmem:[#allocation8 + $0x10] sm:$0xff]  ;;  %v101_v8 = vld [vmem:[#allocation8 + $0x18] sm:$0xff]  ;;  %v3003_v9 = vpack.c.bf16 %v97_v6, %v96_v4  ;;  %v109_v11 = vld [vmem:[#allocation2] sm:$0xff]  ;;  %s2874_s22 = smov 64  }
  0x5d   :  { %v3006_v10 = vpack.c.bf16 %v101_v8, %v100_v7  ;;  %v108_v12 = vld [vmem:[#allocation5] sm:$0xff]  ;;  %v103_v28 = vld [vmem:[#allocation10] sm:$0xff]  ;;  %v105_v30 = vld [vmem:[#allocation10 + $0x10] sm:$0xff] }
  0x5e   :  { %2518 = vmatpush3.bf16.msra.mxu0 %v3001_v5  ;;  %2524 = vmatpush3.bf16.msra.mxu1 %v3003_v9  ;;  %v3026_v15 = vld [vmem:[%s3248_s4] ss:$0 sm:$0xff]  ;;  %v106_v32 = vld [vmem:[#allocation10 + $0x18] sm:$0xff]  ;;  %s2875_s4 = smov 96   ;;  %v376_v42 = vld [vmem:[#allocation2 + $0x8] sm:$0xff] }
  0x5f   :  { %2519 = vmatprep.subr.bf16.mxu0 %v2870_v0  ;;  %2525 = vmatprep.subr.bf16.mxu1 %v2870_v0  ;;  %v104_v29 = vld [vmem:[#allocation10 + $0x8] sm:$0xff]  ;;  %v3034_v33 = vpack.c.bf16 %v106_v32, %v105_v30  ;;  %v624_v7 = vld [vmem:[#allocation2 + $0x10] sm:$0xff] }
  0x60   :  { %v3031_v31 = vpack.c.bf16 %v104_v29, %v103_v28  ;;  %v3064_v43 = vld [vmem:[%s3250_s6] ss:$0 sm:$0xff]  ;;  %s2876_s6 = smov [#allocation12]  }
  0x61   :  { %2300 = vmatmul.mubr.msk.f32.vlgmr.msra.gmra.mrb[0].mxu1 %vm184_vm1, %v109_v11  ;;  %s2131_s25 = sshll.u32 %s2876_s6, 4  ;;  %s2132_s25 = int_to_ptr.vmem [resolvable:$true] %s2131_s25 }
  0x62   :  { %2521 = vmatpush3.bf16.msra.mxu0 %v3006_v10  ;;  %2310 = vmatprep.mubr.msk.f32.mxu1 %vm2871_vm0, %v2872_v1  ;;  %s2809_s26 = scalar_lea.vmem %s2132_s25, 128  ;;  %p2814_p13 = scmp.lt.s32.totalorder %s2132_s25, %s2132_s25 }
  0x63   :  { %2531 = vmatprep.subr.bf16.mxu0 %v2870_v0  ;;  %2527 = vmatpush3.bf16.msra.mxu1 %v3031_v31  ;;  %p2810_p12 = scmp.ne.s32.totalorder %s2132_s25, %s2809_s26  ;;  %p2815_p0 = scmp.lt.s32.totalorder %s2809_s26, %s2809_s26 }
  0x64   :  { %2528 = vmatprep.subr.bf16.mxu1 %v2870_v0 }
  0x65   :  { %2293 = vmatmul.mubr.msk.f32.vlgmr.msra.gmra.mrb[0].mxu0 %vm110_vm2, %v108_v12  ;;  %p2816_p1 = por %p2815_p0, %p2814_p13 }
  0x66   :  { %2533 = vmatpush3.bf16.msra.mxu0 %v3001_v5  ;;  %2321 = vmatprep.mubr.msk.f32.mxu0 %vm2871_vm0, %v2872_v1 }
  0x67   :  { %2534 = vmatprep.subr.bf16.mxu0 %v2870_v0  ;;  %2530 = vmatpush3.bf16.msra.mxu1 %v3034_v33  ;;  %p2817_p2 = pnand %p2816_p1, %p2810_p12 }
  0x68   :  { %2537 = vmatprep.subr.bf16.mxu1 %v2870_v0 }
  0x6a   :  { %2536 = vmatpush3.bf16.msra.mxu0 %v3006_v10 }
  0x6b   :  { %2540 = vmatprep.subr.bf16.mxu0 %v2870_v0 }
 0x134   :  { %v254_v13 = vpop.f32.mrb[0].mxu1 }
 0x135   :  { %v2301_v14 = vpop.f32.mrb[1].mxu1 }
 0x138   :  { %v180_v16 = vpop.f32.mrb[0].mxu0 }
 0x139   :  { %v255_v17 = vadd.f32 %v254_v13, %v180_v16  ;;  %v2294_v18 = vpop.f32.mrb[1].mxu0 }
 0x13b   :  { %v264_v19 = vadd.f32 %v3026_v15, %v255_v17 }
 0x13d   :  { %272 = vrot.lane.b32.xlu0 %v264_v19, %s2873_s21  ;;  %v2149_v20 = vmul.f32 -1.442695, %v264_v19 }
 0x13f   :  { %2651 = vpow2.f32 %v2149_v20 }
 0x149   :  { %v2652_v21 = vpop.eup %2651 }
 0x14a   :  { %v268_v22 = vadd.f32 1.0, %v2652_v21 }
 0x14c   :  { %2653 = vrcp.f32 %v268_v22 }
 0x156   :  { %v2654_v23 = vpop.eup %2653 }
 0x157   :  { %v282_v36 = vsub.f32 1.0, %v2654_v23 }
 0x1af   :  { %v273_v24 = vpop.permute.xlu0 %272 }
 0x1b0   :  { %v275_v25 = vmul.f32 %v2654_v23, %v273_v24 }
 0x1b2   :  { %277 = vrot.lane.b32.xlu0 %v275_v25, %s2874_s22 }
 0x224   :  { %v278_v26 = vpop.permute.xlu0 %277 }
 0x225   :  { %v280_v27 = vadd.f32 %v278_v26, %v264_v19 }
 0x227   :  { %2655 = vtanh.f32 %v280_v27 }
 0x231   :  { %v2656_v34 = vpop.eup %2655 }
 0x232   :  { %284 = vrot.lane.b32.xlu1 %v2656_v34, %s2875_s4 }
 0x236   :  { %288 = vrot.lane.b32.xlu1 %v108_v12, %s2873_s21 }
 0x2a4   :  { %v285_v35 = vpop.permute.xlu1 %284 }
 0x2a5   :  { %v287_v38 = vmul.f32 %v285_v35, %v282_v36 }
 0x2a8   :  { %v289_v37 = vpop.permute.xlu1 %288 }
 0x2a9   :  { %v291_v39 = vmul.f32 %v2654_v23, %v289_v37  ;;  %v872_v37 = vld [vmem:[#allocation2 + $0x18] sm:$0xff] }
 0x2ab   :  { %v292_v40 = vadd.f32 %v291_v39, %v287_v38 }
 0x2ad   :  { %300 = vrot.lane.b32.xlu0 %v292_v40, %s2875_s4 }
 0x31f   :  { %v301_v41 = vpop.permute.xlu0 %300 }
 0x320   :  { %2311 = vmatmul.mubr.msk.f32.vlgmr.msra.gmra.mrb[2].mxu1 %vm110_vm2, %v301_v41  ;;  %2322 = vmatmul.mubr.msk.f32.vlgmr.msra.gmra.mrb[2].mxu0 %vm110_vm2, %v301_v41 }
 0x321   :  { %2539 = vmatpush3.bf16.msra.mxu1 %v3003_v9  ;;  %2328 = vmatprep.mubr.msk.f32.mxu1 %vm2871_vm0, %v2872_v1 }
 0x322   :  { %2546 = vmatprep.subr.bf16.mxu1 %v2870_v0  ;;  %2542 = vmatpush3.bf16.msra.mxu0 %v3031_v31 }
 0x323   :  { %2543 = vmatprep.subr.bf16.mxu0 %v2870_v0  ;;  %2339 = vmatprep.mubr.msk.f32.mxu0 %vm2871_vm0, %v2872_v1 }
 0x324   :  { %2329 = vmatmul.mubr.msk.f32.vlgmr.msra.gmra.mrb[4].mxu1 %vm184_vm1, %v376_v42 }
 0x325   :  { %2548 = vmatpush3.bf16.msra.mxu1 %v3001_v5  ;;  %2350 = vmatprep.mubr.msk.f32.mxu1 %vm2871_vm0, %v2872_v1 }
 0x326   :  { %2549 = vmatprep.subr.bf16.mxu1 %v2870_v0  ;;  %2545 = vmatpush3.bf16.msra.mxu0 %v3034_v33 }
 0x327   :  { %2561 = vmatprep.subr.bf16.mxu0 %v2870_v0 }
 0x329   :  { %2551 = vmatpush3.bf16.msra.mxu1 %v3006_v10 }
 0x32a   :  { %2552 = vmatprep.subr.bf16.mxu1 %v2870_v0 }
 0x3f3   :  { %v370_v44 = vpop.f32.mrb[2].mxu1  ;;  %v443_v45 = vpop.f32.mrb[2].mxu0 }
 0x3f4   :  { %v371_v46 = vadd.f32 %v3064_v43, %v370_v44  ;;  %v2312_v47 = vpop.f32.mrb[3].mxu1  ;;  %v2323_v48 = vpop.f32.mrb[3].mxu0 }
 0x3f6   :  { %374 = vst [vmem:[#allocation11] sm:$0xff] %v371_v46 }
 0x3f7   :  { %v516_v49 = vpop.f32.mrb[4].mxu1 }
 0x3f8   :  { %v517_v50 = vadd.f32 %v516_v49, %v443_v45  ;;  %v2330_v51 = vpop.f32.mrb[5].mxu1 }
 0x3fa   :  { %v520_v52 = vadd.f32 %v3026_v15, %v517_v50 }
 0x3fc   :  { %528 = vrot.lane.b32.xlu1 %v520_v52, %s2873_s21  ;;  %v2154_v53 = vmul.f32 -1.442695, %v520_v52 }
 0x3fe   :  { %2657 = vpow2.f32 %v2154_v53 }
 0x408   :  { %v2658_v54 = vpop.eup %2657 }
 0x409   :  { %v524_v55 = vadd.f32 1.0, %v2658_v54 }
 0x40b   :  { %2659 = vrcp.f32 %v524_v55 }
 0x415   :  { %v2660_v56 = vpop.eup %2659 }
 0x416   :  { %v538_v62 = vsub.f32 1.0, %v2660_v56  ;;  %v544_v2 = vmul.f32 %v2660_v56, %v292_v40 }
 0x46e   :  { %v529_v57 = vpop.permute.xlu1 %528 }
 0x46f   :  { %v531_v58 = vmul.f32 %v2660_v56, %v529_v57 }
 0x471   :  { %533 = vrot.lane.b32.xlu0 %v531_v58, %s2874_s22 }
 0x4e3   :  { %v534_v59 = vpop.permute.xlu0 %533 }
 0x4e4   :  { %v536_v60 = vadd.f32 %v534_v59, %v520_v52 }
 0x4e6   :  { %2661 = vtanh.f32 %v536_v60 }
 0x4f0   :  { %v2662_v61 = vpop.eup %2661 }
 0x4f1   :  { %540 = vrot.lane.b32.xlu1 %v2662_v61, %s2875_s4 }
 0x563   :  { %v541_v63 = vpop.permute.xlu1 %540 }
 0x564   :  { %v543_v3 = vmul.f32 %v541_v63, %v538_v62  ;;  %v1120_v63 = vld [vmem:[#allocation2 + $0x20] sm:$0xff] }
 0x566   :  { %v545_v4 = vadd.f32 %v544_v2, %v543_v3 }
 0x568   :  { %547 = vrot.lane.b32.xlu0 %v545_v4, %s2875_s4 }
 0x5da   :  { %v548_v6 = vpop.permute.xlu0 %547 }
 0x5db   :  { %2340 = vmatmul.mubr.msk.f32.vlgmr.msra.gmra.mrb[4].mxu0 %vm110_vm2, %v548_v6  ;;  %2351 = vmatmul.mubr.msk.f32.vlgmr.msra.gmra.mrb[6].mxu1 %vm110_vm2, %v548_v6 }
 0x5dc   :  { %2554 = vmatpush3.bf16.msra.mxu1 %v3003_v9  ;;  %2357 = vmatprep.mubr.msk.f32.mxu1 %vm2871_vm0, %v2872_v1 }
 0x5dd   :  { %2555 = vmatprep.subr.bf16.mxu1 %v2870_v0  ;;  %2563 = vmatpush3.bf16.msra.mxu0 %v3001_v5 }
 0x5de   :  { %2564 = vmatprep.subr.bf16.mxu0 %v2870_v0  ;;  %2379 = vmatprep.mubr.msk.f32.mxu0 %vm2871_vm0, %v2872_v1 }
 0x5df   :  { %2358 = vmatmul.mubr.msk.f32.vlgmr.msra.gmra.mrb[8].mxu1 %vm184_vm1, %v624_v7 }
 0x5e0   :  { %2557 = vmatpush3.bf16.msra.mxu1 %v3031_v31  ;;  %2368 = vmatprep.mubr.msk.f32.mxu1 %vm2871_vm0, %v2872_v1 }
 0x5e1   :  { %2558 = vmatprep.subr.bf16.mxu1 %v2870_v0  ;;  %2566 = vmatpush3.bf16.msra.mxu0 %v3006_v10 }
 0x5e2   :  { %2570 = vmatprep.subr.bf16.mxu0 %v2870_v0 }
 0x5e4   :  { %2560 = vmatpush3.bf16.msra.mxu1 %v3034_v33 }
 0x5e5   :  { %2567 = vmatprep.subr.bf16.mxu1 %v2870_v0 }
 0x6ae   :  { %v617_v8 = vpop.f32.mrb[4].mxu0  ;;  %v691_v11 = vpop.f32.mrb[6].mxu1 }
 0x6af   :  { %v618_v12 = vadd.f32 %v3064_v43, %v617_v8  ;;  %v2341_v13 = vpop.f32.mrb[5].mxu0  ;;  %v2352_v14 = vpop.f32.mrb[7].mxu1 }
 0x6b1   :  { %622 = vst [vmem:[#allocation11 + $0x8] sm:$0xff] %v618_v12 }
 0x6b2   :  { %v764_v16 = vpop.f32.mrb[8].mxu1 }
 0x6b3   :  { %v765_v17 = vadd.f32 %v764_v16, %v691_v11  ;;  %v2359_v18 = vpop.f32.mrb[9].mxu1 }
 0x6b5   :  { %v768_v19 = vadd.f32 %v3026_v15, %v765_v17 }
 0x6b7   :  { %776 = vrot.lane.b32.xlu1 %v768_v19, %s2873_s21  ;;  %v2158_v20 = vmul.f32 -1.442695, %v768_v19 }
 0x6b9   :  { %2663 = vpow2.f32 %v2158_v20 }
 0x6c3   :  { %v2664_v21 = vpop.eup %2663 }
 0x6c4   :  { %v772_v22 = vadd.f32 1.0, %v2664_v21 }
 0x6c6   :  { %2665 = vrcp.f32 %v772_v22 }
 0x6d0   :  { %v2666_v23 = vpop.eup %2665 }
 0x6d1   :  { %v786_v29 = vsub.f32 1.0, %v2666_v23  ;;  %v792_v32 = vmul.f32 %v2666_v23, %v545_v4 }
 0x729   :  { %v777_v24 = vpop.permute.xlu1 %776 }
 0x72a   :  { %v779_v25 = vmul.f32 %v2666_v23, %v777_v24 }
 0x72c   :  { %781 = vrot.lane.b32.xlu0 %v779_v25, %s2874_s22 }
 0x79e   :  { %v782_v26 = vpop.permute.xlu0 %781 }
 0x79f   :  { %v784_v27 = vadd.f32 %v782_v26, %v768_v19 }
 0x7a1   :  { %2667 = vtanh.f32 %v784_v27 }
 0x7ab   :  { %v2668_v28 = vpop.eup %2667 }
 0x7ac   :  { %788 = vrot.lane.b32.xlu1 %v2668_v28, %s2875_s4 }
 0x81e   :  { %v789_v30 = vpop.permute.xlu1 %788 }
 0x81f   :  { %v791_v34 = vmul.f32 %v789_v30, %v786_v29  ;;  %v1368_v30 = vld [vmem:[#allocation2 + $0x28] sm:$0xff] }
 0x821   :  { %v793_v35 = vadd.f32 %v792_v32, %v791_v34 }
 0x823   :  { %795 = vrot.lane.b32.xlu0 %v793_v35, %s2875_s4 }
 0x895   :  { %v796_v36 = vpop.permute.xlu0 %795 }
 0x896   :  { %2369 = vmatmul.mubr.msk.f32.vlgmr.msra.gmra.mrb[10].mxu1 %vm110_vm2, %v796_v36  ;;  %2380 = vmatmul.mubr.msk.f32.vlgmr.msra.gmra.mrb[6].mxu0 %vm110_vm2, %v796_v36 }
 0x897   :  { %2569 = vmatpush3.bf16.msra.mxu1 %v3003_v9  ;;  %2386 = vmatprep.mubr.msk.f32.mxu1 %vm2871_vm0, %v2872_v1 }
 0x898   :  { %2572 = vmatpush3.bf16.msra.mxu0 %v3031_v31  ;;  %2576 = vmatprep.subr.bf16.mxu1 %v2870_v0 }
 0x899   :  { %2573 = vmatprep.subr.bf16.mxu0 %v2870_v0  ;;  %2397 = vmatprep.mubr.msk.f32.mxu0 %vm2871_vm0, %v2872_v1 }
 0x89a   :  { %2387 = vmatmul.mubr.msk.f32.vlgmr.msra.gmra.mrb[12].mxu1 %vm184_vm1, %v872_v37 }
 0x89b   :  { %2578 = vmatpush3.bf16.msra.mxu1 %v3001_v5  ;;  %2408 = vmatprep.mubr.msk.f32.mxu1 %vm2871_vm0, %v2872_v1 }
 0x89c   :  { %2575 = vmatpush3.bf16.msra.mxu0 %v3034_v33  ;;  %2579 = vmatprep.subr.bf16.mxu1 %v2870_v0 }
 0x89d   :  { %2582 = vmatprep.subr.bf16.mxu0 %v2870_v0 }
 0x89f   :  { %2581 = vmatpush3.bf16.msra.mxu1 %v3006_v10 }
 0x8a0   :  { %2585 = vmatprep.subr.bf16.mxu1 %v2870_v0 }
 0x969   :  { %v865_v38 = vpop.f32.mrb[10].mxu1  ;;  %v939_v39 = vpop.f32.mrb[6].mxu0 }
 0x96a   :  { %v866_v40 = vadd.f32 %v3064_v43, %v865_v38  ;;  %v2370_v41 = vpop.f32.mrb[11].mxu1  ;;  %v2381_v42 = vpop.f32.mrb[7].mxu0 }
 0x96c   :  { %870 = vst [vmem:[#allocation11 + $0x10] sm:$0xff] %v866_v40 }
 0x96d   :  { %v1012_v44 = vpop.f32.mrb[12].mxu1 }
 0x96e   :  { %v1013_v45 = vadd.f32 %v1012_v44, %v939_v39  ;;  %v2388_v46 = vpop.f32.mrb[13].mxu1 }
 0x970   :  { %v1016_v47 = vadd.f32 %v3026_v15, %v1013_v45 }
 0x972   :  { %1024 = vrot.lane.b32.xlu1 %v1016_v47, %s2873_s21  ;;  %v2162_v48 = vmul.f32 -1.442695, %v1016_v47 }
 0x974   :  { %2669 = vpow2.f32 %v2162_v48 }
 0x97e   :  { %v2670_v49 = vpop.eup %2669 }
 0x97f   :  { %v1020_v50 = vadd.f32 1.0, %v2670_v49 }
 0x981   :  { %2671 = vrcp.f32 %v1020_v50 }
 0x98b   :  { %v2672_v51 = vpop.eup %2671 }
 0x98c   :  { %v1034_v57 = vsub.f32 1.0, %v2672_v51  ;;  %v1040_v59 = vmul.f32 %v2672_v51, %v793_v35 }
 0x9e4   :  { %v1025_v52 = vpop.permute.xlu1 %1024 }
 0x9e5   :  { %v1027_v53 = vmul.f32 %v2672_v51, %v1025_v52 }
 0x9e7   :  { %1029 = vrot.lane.b32.xlu0 %v1027_v53, %s2874_s22 }
 0xa59   :  { %v1030_v54 = vpop.permute.xlu0 %1029 }
 0xa5a   :  { %v1032_v55 = vadd.f32 %v1030_v54, %v1016_v47 }
 0xa5c   :  { %2673 = vtanh.f32 %v1032_v55 }
 0xa66   :  { %v2674_v56 = vpop.eup %2673 }
 0xa67   :  { %1036 = vrot.lane.b32.xlu1 %v2674_v56, %s2875_s4 }
 0xad9   :  { %v1037_v58 = vpop.permute.xlu1 %1036 }
 0xada   :  { %v1039_v60 = vmul.f32 %v1037_v58, %v1034_v57  ;;  %v1616_v58 = vld [vmem:[#allocation2 + $0x30] sm:$0xff] }
 0xadc   :  { %v1041_v61 = vadd.f32 %v1040_v59, %v1039_v60 }
 0xade   :  { %1043 = vrot.lane.b32.xlu0 %v1041_v61, %s2875_s4 }
 0xb50   :  { %v1044_v62 = vpop.permute.xlu0 %1043 }
 0xb51   :  { %2398 = vmatmul.mubr.msk.f32.vlgmr.msra.gmra.mrb[8].mxu0 %vm110_vm2, %v1044_v62  ;;  %2409 = vmatmul.mubr.msk.f32.vlgmr.msra.gmra.mrb[14].mxu1 %vm110_vm2, %v1044_v62 }
 0xb52   :  { %2584 = vmatpush3.bf16.msra.mxu0 %v3003_v9  ;;  %2415 = vmatprep.mubr.msk.f32.mxu0 %vm2871_vm0, %v2872_v1 }
 0xb53   :  { %2587 = vmatpush3.bf16.msra.mxu1 %v3031_v31  ;;  %2591 = vmatprep.subr.bf16.mxu0 %v2870_v0 }
 0xb54   :  { %2588 = vmatprep.subr.bf16.mxu1 %v2870_v0  ;;  %2426 = vmatprep.mubr.msk.f32.mxu1 %vm2871_vm0, %v2872_v1 }
 0xb55   :  { %2416 = vmatmul.mubr.msk.f32.vlgmr.msra.gmra.mrb[10].mxu0 %vm184_vm1, %v1120_v63 }
 0xb56   :  { %2593 = vmatpush3.bf16.msra.mxu0 %v3001_v5  ;;  %2437 = vmatprep.mubr.msk.f32.mxu0 %vm2871_vm0, %v2872_v1 }
 0xb57   :  { %2590 = vmatpush3.bf16.msra.mxu1 %v3034_v33  ;;  %2594 = vmatprep.subr.bf16.mxu0 %v2870_v0 }
 0xb58   :  { %2597 = vmatprep.subr.bf16.mxu1 %v2870_v0 }
 0xb5a   :  { %2596 = vmatpush3.bf16.msra.mxu0 %v3006_v10 }
 0xb5b   :  { %2600 = vmatprep.subr.bf16.mxu0 %v2870_v0 }
 0xc24   :  { %v1113_v2 = vpop.f32.mrb[8].mxu0  ;;  %v1187_v3 = vpop.f32.mrb[14].mxu1 }
 0xc25   :  { %v1114_v4 = vadd.f32 %v3064_v43, %v1113_v2  ;;  %v2399_v6 = vpop.f32.mrb[9].mxu0  ;;  %v2410_v7 = vpop.f32.mrb[15].mxu1 }
 0xc27   :  { %1118 = vst [vmem:[#allocation11 + $0x18] sm:$0xff] %v1114_v4 }
 0xc28   :  { %v1260_v8 = vpop.f32.mrb[10].mxu0 }
 0xc29   :  { %v1261_v11 = vadd.f32 %v1260_v8, %v1187_v3  ;;  %v2417_v12 = vpop.f32.mrb[11].mxu0 }
 0xc2b   :  { %v1264_v13 = vadd.f32 %v3026_v15, %v1261_v11 }
 0xc2d   :  { %1272 = vrot.lane.b32.xlu1 %v1264_v13, %s2873_s21  ;;  %v2166_v14 = vmul.f32 -1.442695, %v1264_v13 }
 0xc2f   :  { %2675 = vpow2.f32 %v2166_v14 }
 0xc39   :  { %v2676_v16 = vpop.eup %2675 }
 0xc3a   :  { %v1268_v17 = vadd.f32 1.0, %v2676_v16 }
 0xc3c   :  { %2677 = vrcp.f32 %v1268_v17 }
 0xc46   :  { %v2678_v18 = vpop.eup %2677 }
 0xc47   :  { %v1282_v24 = vsub.f32 1.0, %v2678_v18  ;;  %v1288_v26 = vmul.f32 %v2678_v18, %v1041_v61 }
 0xc9f   :  { %v1273_v19 = vpop.permute.xlu1 %1272 }
 0xca0   :  { %v1275_v20 = vmul.f32 %v2678_v18, %v1273_v19 }
 0xca2   :  { %1277 = vrot.lane.b32.xlu0 %v1275_v20, %s2874_s22 }
 0xd14   :  { %v1278_v21 = vpop.permute.xlu0 %1277 }
 0xd15   :  { %v1280_v22 = vadd.f32 %v1278_v21, %v1264_v13 }
 0xd17   :  { %2679 = vtanh.f32 %v1280_v22 }
 0xd21   :  { %v2680_v23 = vpop.eup %2679 }
 0xd22   :  { %1284 = vrot.lane.b32.xlu1 %v2680_v23, %s2875_s4  ;;  %v1864_v23 = vld [vmem:[#allocation2 + $0x38] sm:$0xff] }
 0xd94   :  { %v1285_v25 = vpop.permute.xlu1 %1284 }
 0xd95   :  { %v1287_v27 = vmul.f32 %v1285_v25, %v1282_v24 }
 0xd97   :  { %v1289_v28 = vadd.f32 %v1288_v26, %v1287_v27 }
 0xd99   :  { %1291 = vrot.lane.b32.xlu0 %v1289_v28, %s2875_s4 }
 0xe0b   :  { %v1292_v29 = vpop.permute.xlu0 %1291 }
 0xe0c   :  { %2427 = vmatmul.mubr.msk.f32.vlgmr.msra.gmra.mrb[16].mxu1 %vm110_vm2, %v1292_v29  ;;  %2438 = vmatmul.mubr.msk.f32.vlgmr.msra.gmra.mrb[12].mxu0 %vm110_vm2, %v1292_v29 }
 0xe0d   :  { %2599 = vmatpush3.bf16.msra.mxu1 %v3003_v9  ;;  %2444 = vmatprep.mubr.msk.f32.mxu1 %vm2871_vm0, %v2872_v1 }
 0xe0e   :  { %2602 = vmatpush3.bf16.msra.mxu0 %v3031_v31  ;;  %2606 = vmatprep.subr.bf16.mxu1 %v2870_v0 }
 0xe0f   :  { %2603 = vmatprep.subr.bf16.mxu0 %v2870_v0  ;;  %2455 = vmatprep.mubr.msk.f32.mxu0 %vm2871_vm0, %v2872_v1 }
 0xe10   :  { %2445 = vmatmul.mubr.msk.f32.vlgmr.msra.gmra.mrb[18].mxu1 %vm184_vm1, %v1368_v30 }
 0xe11   :  { %2608 = vmatpush3.bf16.msra.mxu1 %v3001_v5  ;;  %2466 = vmatprep.mubr.msk.f32.mxu1 %vm2871_vm0, %v2872_v1 }
 0xe12   :  { %2605 = vmatpush3.bf16.msra.mxu0 %v3034_v33  ;;  %2609 = vmatprep.subr.bf16.mxu1 %v2870_v0 }
 0xe13   :  { %2612 = vmatprep.subr.bf16.mxu0 %v2870_v0 }
 0xe15   :  { %2611 = vmatpush3.bf16.msra.mxu1 %v3006_v10 }
 0xe16   :  { %2615 = vmatprep.subr.bf16.mxu1 %v2870_v0 }
 0xedf   :  { %v1361_v32 = vpop.f32.mrb[16].mxu1  ;;  %v1435_v34 = vpop.f32.mrb[12].mxu0 }
 0xee0   :  { %v1362_v35 = vadd.f32 %v3064_v43, %v1361_v32  ;;  %v2428_v36 = vpop.f32.mrb[17].mxu1  ;;  %v2439_v37 = vpop.f32.mrb[13].mxu0 }
 0xee2   :  { %1366 = vst [vmem:[#allocation11 + $0x20] sm:$0xff] %v1362_v35 }
 0xee3   :  { %v1508_v38 = vpop.f32.mrb[18].mxu1 }
 0xee4   :  { %v1509_v39 = vadd.f32 %v1508_v38, %v1435_v34  ;;  %v2446_v40 = vpop.f32.mrb[19].mxu1 }
 0xee6   :  { %v1512_v41 = vadd.f32 %v3026_v15, %v1509_v39 }
 0xee8   :  { %1520 = vrot.lane.b32.xlu1 %v1512_v41, %s2873_s21  ;;  %v2170_v42 = vmul.f32 -1.442695, %v1512_v41 }
 0xeea   :  { %2681 = vpow2.f32 %v2170_v42 }
 0xef4   :  { %v2682_v44 = vpop.eup %2681 }
 0xef5   :  { %v1516_v45 = vadd.f32 1.0, %v2682_v44 }
 0xef7   :  { %2683 = vrcp.f32 %v1516_v45 }
 0xf01   :  { %v2684_v46 = vpop.eup %2683 }
 0xf02   :  { %v1530_v52 = vsub.f32 1.0, %v2684_v46  ;;  %v1536_v54 = vmul.f32 %v2684_v46, %v1289_v28 }
 0xf5a   :  { %v1521_v47 = vpop.permute.xlu1 %1520 }
 0xf5b   :  { %v1523_v48 = vmul.f32 %v2684_v46, %v1521_v47 }
 0xf5d   :  { %1525 = vrot.lane.b32.xlu0 %v1523_v48, %s2874_s22 }
 0xfcf   :  { %v1526_v49 = vpop.permute.xlu0 %1525 }
 0xfd0   :  { %v1528_v50 = vadd.f32 %v1526_v49, %v1512_v41 }
 0xfd2   :  { %2685 = vtanh.f32 %v1528_v50 }
 0xfdc   :  { %v2686_v51 = vpop.eup %2685 }
 0xfdd   :  { %1532 = vrot.lane.b32.xlu1 %v2686_v51, %s2875_s4 }
0x104f   :  { %v1533_v53 = vpop.permute.xlu1 %1532 }
0x1050   :  { %v1535_v55 = vmul.f32 %v1533_v53, %v1530_v52 }
0x1052   :  { %v1537_v56 = vadd.f32 %v1536_v54, %v1535_v55 }
0x1054   :  { %1539 = vrot.lane.b32.xlu0 %v1537_v56, %s2875_s4 }
0x10c6   :  { %v1540_v57 = vpop.permute.xlu0 %1539 }
0x10c7   :  { %2456 = vmatmul.mubr.msk.f32.vlgmr.msra.gmra.mrb[14].mxu0 %vm110_vm2, %v1540_v57  ;;  %2467 = vmatmul.mubr.msk.f32.vlgmr.msra.gmra.mrb[20].mxu1 %vm110_vm2, %v1540_v57 }
0x10c8   :  { %2614 = vmatpush3.bf16.msra.mxu0 %v3003_v9  ;;  %2473 = vmatprep.mubr.msk.f32.mxu0 %vm2871_vm0, %v2872_v1 }
0x10c9   :  { %2617 = vmatpush3.bf16.msra.mxu1 %v3031_v31  ;;  %2621 = vmatprep.subr.bf16.mxu0 %v2870_v0 }
0x10ca   :  { %2618 = vmatprep.subr.bf16.mxu1 %v2870_v0  ;;  %2484 = vmatprep.mubr.msk.f32.mxu1 %vm2871_vm0, %v2872_v1 }
0x10cb   :  { %2474 = vmatmul.mubr.msk.f32.vlgmr.msra.gmra.mrb[16].mxu0 %vm184_vm1, %v1616_v58 }
0x10cc   :  { %2623 = vmatpush3.bf16.msra.mxu0 %v3001_v5  ;;  %2495 = vmatprep.mubr.msk.f32.mxu0 %vm2871_vm0, %v2872_v1 }
0x10cd   :  { %2620 = vmatpush3.bf16.msra.mxu1 %v3034_v33  ;;  %2624 = vmatprep.subr.bf16.mxu0 %v2870_v0 }
0x10ce   :  { %2627 = vmatprep.subr.bf16.mxu1 %v2870_v0 }
0x10d0   :  { %2626 = vmatpush3.bf16.msra.mxu0 %v3006_v10 }
0x10d1   :  { %2630 = vmatprep.subr.bf16.mxu0 %v2870_v0 }
0x119a   :  { %v1609_v59 = vpop.f32.mrb[14].mxu0  ;;  %v1683_v60 = vpop.f32.mrb[20].mxu1 }
0x119b   :  { %v1610_v61 = vadd.f32 %v3064_v43, %v1609_v59  ;;  %v2457_v62 = vpop.f32.mrb[15].mxu0  ;;  %v2468_v63 = vpop.f32.mrb[21].mxu1 }
0x119d   :  { %1614 = vst [vmem:[#allocation11 + $0x28] sm:$0xff] %v1610_v61 }
0x119e   :  { %v1756_v5 = vpop.f32.mrb[16].mxu0 }
0x119f   :  { %v1757_v2 = vadd.f32 %v1756_v5, %v1683_v60  ;;  %v2475_v3 = vpop.f32.mrb[17].mxu0 }
0x11a1   :  { %v1760_v4 = vadd.f32 %v3026_v15, %v1757_v2 }
0x11a3   :  { %1768 = vrot.lane.b32.xlu1 %v1760_v4, %s2873_s21  ;;  %v2174_v6 = vmul.f32 -1.442695, %v1760_v4 }
0x11a5   :  { %2687 = vpow2.f32 %v2174_v6 }
0x11af   :  { %v2688_v7 = vpop.eup %2687 }
0x11b0   :  { %v1764_v10 = vadd.f32 1.0, %v2688_v7 }
0x11b2   :  { %2689 = vrcp.f32 %v1764_v10 }
0x11bc   :  { %v2690_v8 = vpop.eup %2689 }
0x11bd   :  { %v1778_v17 = vsub.f32 1.0, %v2690_v8  ;;  %v1784_v19 = vmul.f32 %v2690_v8, %v1537_v56 }
0x1215   :  { %v1769_v11 = vpop.permute.xlu1 %1768 }
0x1216   :  { %v1771_v12 = vmul.f32 %v2690_v8, %v1769_v11 }
0x1218   :  { %1773 = vrot.lane.b32.xlu0 %v1771_v12, %s2874_s22 }
0x128a   :  { %v1774_v13 = vpop.permute.xlu0 %1773 }
0x128b   :  { %v1776_v14 = vadd.f32 %v1774_v13, %v1760_v4 }
0x128d   :  { %2691 = vtanh.f32 %v1776_v14 }
0x1297   :  { %v2692_v16 = vpop.eup %2691 }
0x1298   :  { %1780 = vrot.lane.b32.xlu1 %v2692_v16, %s2875_s4 }
0x130a   :  { %v1781_v18 = vpop.permute.xlu1 %1780 }
0x130b   :  { %v1783_v20 = vmul.f32 %v1781_v18, %v1778_v17 }
0x130d   :  { %v1785_v21 = vadd.f32 %v1784_v19, %v1783_v20 }
0x130f   :  { %1787 = vrot.lane.b32.xlu0 %v1785_v21, %s2875_s4 }
0x1381   :  { %v1788_v22 = vpop.permute.xlu0 %1787 }
0x1382   :  { %2485 = vmatmul.mubr.msk.f32.vlgmr.msra.gmra.mrb[22].mxu1 %vm110_vm2, %v1788_v22  ;;  %2496 = vmatmul.mubr.msk.f32.vlgmr.msra.gmra.mrb[18].mxu0 %vm110_vm2, %v1788_v22 }
0x1383   :  { %2629 = vmatpush3.bf16.msra.mxu1 %v3003_v9  ;;  %2502 = vmatprep.mubr.msk.f32.mxu1 %vm2871_vm0, %v2872_v1 }
0x1384   :  { %2632 = vmatpush3.bf16.msra.mxu0 %v3031_v31  ;;  %2513 = vmatprep.mubr.msk.f32.mxu0 %vm2871_vm0, %v2872_v1 }
0x1385   :  { %2633 = vmatprep.subr.bf16.mxu0 %v2870_v0 }
0x1386   :  { %2503 = vmatmul.mubr.msk.f32.vlgmr.msra.gmra.mrb[24].mxu1 %vm184_vm1, %v1864_v23 }
0x1388   :  { %2635 = vmatpush3.bf16.msra.mxu0 %v3034_v33 }
0x1455   :  { %v1857_v24 = vpop.f32.mrb[22].mxu1  ;;  %v1931_v25 = vpop.f32.mrb[18].mxu0 }
0x1456   :  { %v1858_v26 = vadd.f32 %v3064_v43, %v1857_v24  ;;  %v2486_v9 = vpop.f32.mrb[23].mxu1  ;;  %v2497_v27 = vpop.f32.mrb[19].mxu0 }
0x1458   :  { %1862 = vst [vmem:[#allocation11 + $0x30] sm:$0xff] %v1858_v26 }
0x1459   :  { %v2004_v28 = vpop.f32.mrb[24].mxu1 }
0x145a   :  { %v2005_v29 = vadd.f32 %v2004_v28, %v1931_v25  ;;  %v2504_v30 = vpop.f32.mrb[25].mxu1 }
0x145c   :  { %v2008_v31 = vadd.f32 %v3026_v15, %v2005_v29 }
0x145e   :  { %2016 = vrot.lane.b32.xlu1 %v2008_v31, %s2873_s21  ;;  %v2178_v1 = vmul.f32 -1.442695, %v2008_v31 }
0x1460   :  { %2693 = vpow2.f32 %v2178_v1 }
0x146a   :  { %v2694_v0 = vpop.eup %2693 }
0x146b   :  { %v2012_v32 = vadd.f32 1.0, %v2694_v0 }
0x146d   :  { %2695 = vrcp.f32 %v2012_v32 }
0x1477   :  { %v2696_v33 = vpop.eup %2695 }
0x1478   :  { %v2026_v39 = vsub.f32 1.0, %v2696_v33  ;;  %v2032_v40 = vmul.f32 %v2696_v33, %v1785_v21 }
0x14d0   :  { %v2017_v34 = vpop.permute.xlu1 %2016 }
0x14d1   :  { %v2019_v35 = vmul.f32 %v2696_v33, %v2017_v34 }
0x14d3   :  { %2021 = vrot.lane.b32.xlu0 %v2019_v35, %s2874_s22 }
0x1545   :  { %v2022_v36 = vpop.permute.xlu0 %2021 }
0x1546   :  { %v2024_v37 = vadd.f32 %v2022_v36, %v2008_v31 }
0x1548   :  { %2697 = vtanh.f32 %v2024_v37 }
0x1552   :  { %v2698_v38 = vpop.eup %2697 }
0x1553   :  { %2028 = vrot.lane.b32.xlu1 %v2698_v38, %s2875_s4 }
0x15c5   :  { %v2029_v15 = vpop.permute.xlu1 %2028 }
0x15c6   :  { %v2031_v41 = vmul.f32 %v2029_v15, %v2026_v39 }
0x15c8   :  { %v2033_v42 = vadd.f32 %v2032_v40, %v2031_v41 }
0x15ca   :  { %2035 = vrot.lane.b32.xlu0 %v2033_v42, %s2875_s4 }
0x163c   :  { %v2036_v44 = vpop.permute.xlu0 %2035 }
0x163d   :  { %2112 = vst.msk [vmem:[#allocation12] sm:$0xff] %vm110_vm2, %v2036_v44  ;;  %2514 = vmatmul.mubr.msk.f32.vlgmr.msra.gmra.mrb[20].mxu0 %vm110_vm2, %v2036_v44 }
0x163e   :  { %2820 = shalt.err (!%p2817_p2)
}
0x163f   :  { %s2821_s30 = scalar_lea.hbm %s3252_s8, 128 }
0x1640   :  { %p2822_p3 = scmp.ne.s32.totalorder %s3252_s8, %s2821_s30  ;;  %p2825_p4 = scmp.lt.u32.totalorder %s2821_s30, %s3252_s8 }
0x1642   :  { %p2827_p5 = pnand %p2825_p4, %p2822_p3 }
0x1644   :  { %2830 = shalt.err (!%p2827_p5)
}
0x1645   :  { %2134 = dma.vmem_to_hbm [thread:$0]  %s2132_s25, 128, %s3252_s8, [#allocation13]  }
0x1646   :  { %s2877_s13 = smov [#allocation11]  }
0x1647   :  { %s2118_s14 = sshll.u32 %s2877_s13, 4  ;;  %s2119_s14 = int_to_ptr.vmem [resolvable:$true] %s2118_s14 }
0x1648   :  { %s2831_s15 = scalar_lea.vmem %s2119_s14, 1024  ;;  %p2836_p7 = scmp.lt.s32.totalorder %s2119_s14, %s2119_s14 }
0x1649   :  { %p2832_p6 = scmp.ne.s32.totalorder %s2119_s14, %s2831_s15  ;;  %p2837_p8 = scmp.lt.s32.totalorder %s2831_s15, %s2831_s15 }
0x164b   :  { %p2838_p9 = por %p2837_p8, %p2836_p7 }
0x164d   :  { %p2839_p10 = pnand %p2838_p9, %p2832_p6 }
0x1710   :  { %v2105_v45 = vpop.f32.mrb[20].mxu0 }
0x1711   :  { %v2106_v46 = vadd.f32 %v3064_v43, %v2105_v45  ;;  %v2515_v47 = vpop.f32.mrb[21].mxu0 }
0x1713   :  { %2110 = vst [vmem:[#allocation11 + $0x38] sm:$0xff] %v2106_v46 }
0x1714   :  { %2842 = shalt.err (!%p2839_p10)
}
0x1715   :  { %s2843_s3 = scalar_lea.hbm %s3251_s7, 1024 }
0x1716   :  { %p2844_p11 = scmp.ne.s32.totalorder %s3251_s7, %s2843_s3  ;;  %p2847_p12 = scmp.lt.u32.totalorder %s2843_s3, %s3251_s7 }
0x1718   :  { %p2849_p13 = pnand %p2847_p12, %p2844_p11 }
0x171a   :  { %2852 = shalt.err (!%p2849_p13)
}
0x171b   :  { %2124 = dma.vmem_to_hbm [thread:$0]  %s2119_s14, 1024, %s3251_s7, [#allocation4], %s2866_s28, %s2866_s28, %s2867_s29  }
0x171c   :  { %2859 = dma.done.wait [#allocation4], 1024  }
0x171d   :  { %2860 = vsyncadd [#allocation4], 4294966272 }
0x171e   :  { %2861 = dma.done.wait [#allocation13], 128  }
0x171f   :  { %2862 = vsyncadd [#allocation13], 4294967168 }
0x1720   :  { %2141 = vsyncpa [#allocation3], 1 }
0x1721   :  { %2142 = vsyncpa [#allocation6], 1 }
0x1722   :  { %2143 = vsyncpa [#allocation9], 1 }
0x1723   :  { %2144 = vsyncpa [#allocation4], 1 }
0x1724   :  { %2145 = vsyncpa [#allocation13], 1 }

</bundles_post_ra>
